<compile_context>
chip_gen: v6e
topology: v6e:2x2x1
jax: 0.10.0
libtpu: 0.0.40
codegen_flags: <defaults>
</compile_context>

<pallas_src>
import functools
import math

import jax
import jax.numpy as jnp
from jax.experimental import pallas as pl
from jax.experimental.pallas import tpu as pltpu

# ---------------- model config (small, deterministic) ----------------
VOCAB = 32
EMBED = 16
HIDDEN = 32
NUM_LAYERS = 2
BATCH = 4
SEQ = 8


# ---------------- Pallas kernel ----------------
def _decoder_kernel(num_layers, seq, batch, hidden, vocab,
                    ids_ref, ctx_ref, h0_ref, w_ref, b_ref,
                    out_ref, state_ref, top_acc):
    """Whole decoder forward in one invocation.

    ids_ref : (seq*batch, 1) int32  time-major token ids (batch already padded to 8)
    ctx_ref : (batch, H)            encoder context (= state[-1])
    h0_ref  : (num_layers, batch, H)
    w_ref   : (rows, 4H) packed weights:
                [0:V)        emb_proj   = embedding @ [Wxr|Wxz|Wxn|0]
                [V:V+H)      w_ctx0     = [Wcr|Wcz|Wcn|0]
                [V+H:V+2H)   w_hh0      = [Whr|Whz|0|Whn]
                then per upper layer 2H rows of fused [x|h] weights
                last H rows  dense W (padded to 4H cols)
    b_ref   : (8, 4H) packed biases:
                row l        layer-l gate bias [bir+bhr | biz+bhz | bin | bhn]
                row L        dense bias (padded)
    """
    H = hidden
    L4 = 4 * H
    B = batch

    # ---- static views into the packed slabs (hoisted, zero-cost offsets) ----
    r0 = 0
    emb_proj = w_ref[r0:r0 + vocab, :]; r0 += vocab
    w_ctx0 = w_ref[r0:r0 + H, :];       r0 += H
    w_hh0 = w_ref[r0:r0 + H, :];        r0 += H
    upper_w = []
    for _ in range(num_layers - 1):
        upper_w.append(w_ref[r0:r0 + 2 * H, :])
        r0 += 2 * H
    w_dense = w_ref[r0:r0 + H, :]

    b0 = b_ref[0:1, :]                                        # layer-0 gate biases
    upper_b = [jnp.broadcast_to(b_ref[l:l + 1, :], (B, L4))   # hoisted broadcasts
               for l in range(1, num_layers)]
    b_dense = b_ref[num_layers:num_layers + 1, :]

    # ---- time-batched layer-0 input path (one one-hot MXU matmul) ----
    ids = ids_ref[...]                                                     # (S*B, 1)
    iota = jax.lax.broadcasted_iota(jnp.int32, (seq * B, vocab), 1)
    onehot = (iota == ids).astype(jnp.float32)                            # (S*B, V)
    gi0 = jnp.dot(onehot, emb_proj, preferred_element_type=jnp.float32)   # (S*B, 4H)
    ctx_contrib = (jnp.dot(ctx_ref[...], w_ctx0,
                           preferred_element_type=jnp.float32) + b0)      # (B, 4H)
    # constant-over-time ctx + bias added ONCE (lane/sublane tile aligned)
    gi0_all = gi0.reshape(seq, B, L4) + ctx_contrib[None, :, :]           # (S, B, 4H)

    def gru(pre4, h_prev):
        # pre4 blocks: [r | z | gi_n | gh_n + b_hn]   (biases already folded in)
        rz = jax.nn.sigmoid(pre4[:, :2 * H])           # one EUP dispatch for r and z
        r = rz[:, :H]
        z = rz[:, H:]
        n = jnp.tanh(pre4[:, 2 * H:3 * H] + r * pre4[:, 3 * H:4 * H])
        return (1.0 - z) * n + z * h_prev

    h = [h0_ref[l] for l in range(num_layers)]

    # ---- unrolled recurrence: exactly ONE matmul per layer per timestep ----
    for t in range(seq):
        pre0 = gi0_all[t] + jnp.dot(h[0], w_hh0, preferred_element_type=jnp.float32)
        h[0] = gru(pre0, h[0])
        x_in = h[0]
        for li in range(num_layers - 1):
            l = li + 1
            lhs = jnp.concatenate([x_in, h[l]], axis=1)           # (B, 2H)
            pre = (jnp.dot(lhs, upper_w[li], preferred_element_type=jnp.float32)
                   + upper_b[li])
            h[l] = gru(pre, h[l])
            x_in = h[l]  # dropout=0 / eval -> no-op between layers
        top_acc[t * B:(t + 1) * B, :] = x_in                      # 8-sublane aligned

    # ---- single time-batched, lane-dense (128-wide) output projection ----
    out_ref[...] = (jnp.dot(top_acc[...], w_dense, preferred_element_type=jnp.float32)
                    + b_dense)
    for l in range(num_layers):
        state_ref[l] = h[l]


def decoder_pallas(ids, ctx, h0, w_slab, b_slab, num_layers, seq, batch_p, hidden, vocab):
    lane = w_slab.shape[1]  # = 4*hidden (128 for HIDDEN=32)
    kernel = functools.partial(_decoder_kernel, num_layers, seq, batch_p, hidden, vocab)
    # No grid: total residency ~130 KiB, fully VMEM-resident in one invocation.
    return pl.pallas_call(
        kernel,
        out_shape=(
            jax.ShapeDtypeStruct((seq * batch_p, lane), jnp.float32),
            jax.ShapeDtypeStruct((num_layers, batch_p, hidden), jnp.float32),
        ),
        scratch_shapes=[pltpu.VMEM((seq * batch_p, hidden), jnp.float32)],
    )(ids, ctx, h0, w_slab, b_slab)


# ---------------- host-side weight packing (two lane-dense slabs) ----------------
def pack_params(params):
    H = HIDDEN
    E = EMBED
    lane = 4 * H  # 128
    f32 = jnp.float32

    w_rows = []
    b_rows = []

    # --- layer 0: split concatenated [embed | ctx] input weight ---
    w_ih, w_hh, b_ih, b_hh = params["layers"][0]
    zin0 = jnp.zeros((E + H, H), f32)
    w_i4 = jnp.concatenate([w_ih[0], w_ih[1], w_ih[2], zin0], axis=1)        # (E+H, 4H)
    emb_proj = params["embedding"].astype(f32) @ w_i4[:E, :]                 # (V, 4H)
    w_rows.append(emb_proj)
    w_rows.append(w_i4[E:, :])                                               # ctx rows
    zhh = jnp.zeros((H, H), f32)
    w_rows.append(jnp.concatenate([w_hh[0], w_hh[1], zhh, w_hh[2]], axis=1))  # (H, 4H)
    b_rows.append(jnp.concatenate(
        [b_ih[0] + b_hh[0], b_ih[1] + b_hh[1], b_ih[2], b_hh[2]])[None, :])   # (1, 4H)

    # --- upper layers: fused [x_in | h] weight, (2H, 4H) ---
    for (w_ih, w_hh, b_ih, b_hh) in params["layers"][1:]:
        z = jnp.zeros((H, H), f32)
        top = jnp.concatenate([w_ih[0], w_ih[1], w_ih[2], z], axis=1)        # input rows
        bot = jnp.concatenate([w_hh[0], w_hh[1], z, w_hh[2]], axis=1)        # hidden rows
        w_rows.append(jnp.concatenate([top, bot], axis=0))                   # (2H, 4H)
        b_rows.append(jnp.concatenate(
            [b_ih[0] + b_hh[0], b_ih[1] + b_hh[1], b_ih[2], b_hh[2]])[None, :])

    # --- dense: pad to lane width (128) ---
    wd = params["dense_w_t"]                                                 # (H, V)
    bd = params["dense_b"]                                                   # (1, V)
    w_rows.append(jnp.pad(wd, ((0, 0), (0, lane - wd.shape[1]))))
    b_rows.append(jnp.pad(bd, ((0, 0), (0, lane - bd.shape[1]))))

    w_slab = jnp.concatenate(w_rows, axis=0).astype(f32)
    b_slab = jnp.concatenate(b_rows, axis=0).astype(f32)
    pad = (-b_slab.shape[0]) % 8
    if pad:
        b_slab = jnp.pad(b_slab, ((0, pad), (0, 0)))
    return w_slab, b_slab


# ---------------- wrapper matching Seq2SeqDecoder.forward ----------------
def seq2seq_decoder_forward(params, X_tokens, state):
    """X_tokens: (batch, seq) int32; state: (num_layers, batch, hidden).
    Returns (output (batch, seq, vocab), new_state (num_layers, batch, hidden))."""
    batch, seq = X_tokens.shape
    num_layers, _, hidden = state.shape
    vocab = params["embedding"].shape[0]
    bp = max(8, ((batch + 7) // 8) * 8)              # pad batch to a sublane multiple

    # token ids: pad batch (token 0), time-major, flatten
    ids = jnp.zeros((bp, seq), jnp.int32).at[:batch].set(X_tokens.astype(jnp.int32))
    ids = jnp.transpose(ids, (1, 0)).reshape(seq * bp, 1)

    # padded recurrent state / constant encoder context
    h0 = jnp.zeros((num_layers, bp, hidden), jnp.float32).at[:, :batch].set(
        state.astype(jnp.float32))
    ctx = h0[-1]

    w_slab, b_slab = pack_params(params)
    logits, new_state = decoder_pallas(ids, ctx, h0, w_slab, b_slab,
                                       num_layers, seq, bp, hidden, vocab)

    out = logits.reshape(seq, bp, -1)[:, :batch, :vocab]    # drop pad rows / pad lanes
    out = jnp.transpose(out, (1, 0, 2))                     # (batch, seq, vocab)
    return out, new_state[:, :batch]


# ---------------- pure-JAX reference (for verification) ----------------
def seq2seq_decoder_reference(params, X_tokens, state):
    emb = jnp.take(params["embedding"], X_tokens, axis=0)
    x = jnp.transpose(emb, (1, 0, 2)).astype(jnp.float32)
    seq = x.shape[0]
    context = jnp.broadcast_to(state[-1][None], (seq,) + state[-1].shape)
    xs = jnp.concatenate([x, context], axis=2)

    h = [state[l] for l in range(state.shape[0])]
    outs = []
    for t in range(seq):
        inp = xs[t]
        for l, (w_ih, w_hh, b_ih, b_hh) in enumerate(params["layers"]):
            gi = [inp @ w_ih[g] + b_ih[g] for g in range(3)]
            gh = [h[l] @ w_hh[g] + b_hh[g] for g in range(3)]
            r = jax.nn.sigmoid(gi[0] + gh[0])
            z = jax.nn.sigmoid(gi[1] + gh[1])
            n = jnp.tanh(gi[2] + r * gh[2])
            h[l] = (1.0 - z) * n + z * h[l]
            inp = h[l]
        outs.append(inp @ params["dense_w_t"] + params["dense_b"][0])
    out = jnp.stack(outs, axis=0)
    return jnp.transpose(out, (1, 0, 2)), jnp.stack(h, axis=0)


# ---------------- deterministic parameter init ----------------
def init_params(key):
    ks = jax.random.split(key, 4 + 4 * NUM_LAYERS)
    bound = 1.0 / math.sqrt(HIDDEN)
    params = {
        "embedding": jax.random.normal(ks[0], (VOCAB, EMBED), jnp.float32),
        "dense_w_t": jax.random.uniform(ks[1], (HIDDEN, VOCAB), jnp.float32, -bound, bound),
        "dense_b": jax.random.uniform(ks[2], (1, VOCAB), jnp.float32, -bound, bound),
        "layers": [],
    }
    for l in range(NUM_LAYERS):
        in_dim = (EMBED + HIDDEN) if l == 0 else HIDDEN
        kk = jax.random.split(ks[4 + l], 4)
        # Stored transposed: (3 gates [r,z,n], in_dim, H) so the math is x @ W.
        w_ih = jax.random.uniform(kk[0], (3, in_dim, HIDDEN), jnp.float32, -bound, bound)
        w_hh = jax.random.uniform(kk[1], (3, HIDDEN, HIDDEN), jnp.float32, -bound, bound)
        b_ih = jax.random.uniform(kk[2], (3, HIDDEN), jnp.float32, -bound, bound)
        b_hh = jax.random.uniform(kk[3], (3, HIDDEN), jnp.float32, -bound, bound)
        params["layers"].append((w_ih, w_hh, b_ih, b_hh))
    return params


if __name__ == "__main__":
    key = jax.random.PRNGKey(0)
    kp, kx, kh = jax.random.split(key, 3)
    params = init_params(kp)

    X_tokens = jax.random.randint(kx, (BATCH, SEQ), 0, VOCAB, dtype=jnp.int32)
    state = jax.random.normal(kh, (NUM_LAYERS, BATCH, HIDDEN), jnp.float32) * 0.1

    out, new_state = seq2seq_decoder_forward(params, X_tokens, state)
    out = jax.block_until_ready(out)
    new_state = jax.block_until_ready(new_state)

    assert out.shape == (BATCH, SEQ, VOCAB)
    assert new_state.shape == (NUM_LAYERS, BATCH, HIDDEN)

    # sanity-check against a pure-JAX reference (loose tol for MXU f32 path)
    ref_out, ref_state = seq2seq_decoder_reference(params, X_tokens, state)
    assert jnp.allclose(out, ref_out, atol=2e-2, rtol=2e-2)
    assert jnp.allclose(new_state, ref_state, atol=2e-2, rtol=2e-2)

    print("KERNEL_OK")
</pallas_src>

<mosaic_0001>
module attributes {stable_mosaic.version = 11 : i64} {
  func.func @_decoder_kernel(%arg0: memref<64x1xi32, #tpu.memory_space<vmem>>, %arg1: memref<8x32xf32, #tpu.memory_space<vmem>>, %arg2: memref<2x8x32xf32, #tpu.memory_space<vmem>>, %arg3: memref<192x128xf32, #tpu.memory_space<vmem>>, %arg4: memref<8x128xf32, #tpu.memory_space<vmem>>, %arg5: memref<64x128xf32, #tpu.memory_space<vmem>>, %arg6: memref<2x8x32xf32, #tpu.memory_space<vmem>>, %arg7: memref<64x32xf32, #tpu.memory_space<vmem>>) attributes {dimension_semantics = [], scalar_prefetch = 0 : i64, scratch_operands = 1 : i64, tpu.core_type = #tpu.core_type<tc>} {
    %c0 = arith.constant 0 : index
    %c0_0 = arith.constant 0 : index
    %0 = vector.load %arg3[%c0, %c0_0] : memref<192x128xf32, #tpu.memory_space<vmem>>, vector<32x128xf32>
    %c32 = arith.constant 32 : index
    %c0_1 = arith.constant 0 : index
    %1 = vector.load %arg3[%c32, %c0_1] : memref<192x128xf32, #tpu.memory_space<vmem>>, vector<32x128xf32>
    %c64 = arith.constant 64 : index
    %c0_2 = arith.constant 0 : index
    %2 = vector.load %arg3[%c64, %c0_2] : memref<192x128xf32, #tpu.memory_space<vmem>>, vector<32x128xf32>
    %c96 = arith.constant 96 : index
    %c0_3 = arith.constant 0 : index
    %3 = vector.load %arg3[%c96, %c0_3] : memref<192x128xf32, #tpu.memory_space<vmem>>, vector<64x128xf32>
    %c160 = arith.constant 160 : index
    %c0_4 = arith.constant 0 : index
    %4 = vector.load %arg3[%c160, %c0_4] : memref<192x128xf32, #tpu.memory_space<vmem>>, vector<32x128xf32>
    %c0_5 = arith.constant 0 : index
    %c0_6 = arith.constant 0 : index
    %5 = vector.load %arg4[%c0_5, %c0_6] : memref<8x128xf32, #tpu.memory_space<vmem>>, vector<1x128xf32>
    %c1 = arith.constant 1 : index
    %c0_7 = arith.constant 0 : index
    %6 = vector.load %arg4[%c1, %c0_7] : memref<8x128xf32, #tpu.memory_space<vmem>>, vector<1x128xf32>
    %7 = vector.shape_cast %6 : vector<1x128xf32> to vector<1x128xf32>
    %8 = vector.broadcast %7 : vector<1x128xf32> to vector<8x128xf32>
    %c2 = arith.constant 2 : index
    %c0_8 = arith.constant 0 : index
    %9 = vector.load %arg4[%c2, %c0_8] : memref<8x128xf32, #tpu.memory_space<vmem>>, vector<1x128xf32>
    %c0_9 = arith.constant 0 : index
    %c0_10 = arith.constant 0 : index
    %10 = vector.load %arg0[%c0_9, %c0_10] : memref<64x1xi32, #tpu.memory_space<vmem>>, vector<64x1xi32>
    %11 = tpu.iota {dimensions = array<i32: 1>} : vector<64x32xi32>
    %12 = vector.broadcast %10 : vector<64x1xi32> to vector<64x32xi32>
    %13 = arith.cmpi eq, %11, %12 : vector<64x32xi32>
    %14 = arith.extui %13 : vector<64x32xi1> to vector<64x32xi32>
    %15 = arith.sitofp %14 : vector<64x32xi32> to vector<64x32xf32>
    %cst = arith.constant dense<0.000000e+00> : vector<64x128xf32>
    %16 = tpu.matmul %15, %0, %cst {dimension_numbers = #tpu.dot_dimension_numbers<[1], [0], [0], [1], [0, 0, 1, 1], [], []>} : vector<64x32xf32>, vector<32x128xf32>, vector<64x128xf32> -> vector<64x128xf32>
    %c0_11 = arith.constant 0 : index
    %c0_12 = arith.constant 0 : index
    %17 = vector.load %arg1[%c0_11, %c0_12] : memref<8x32xf32, #tpu.memory_space<vmem>>, vector<8x32xf32>
    %cst_13 = arith.constant dense<0.000000e+00> : vector<8x128xf32>
    %18 = tpu.matmul %17, %1, %cst_13 {dimension_numbers = #tpu.dot_dimension_numbers<[1], [0], [0], [1], [0, 0, 1, 1], [], []>} : vector<8x32xf32>, vector<32x128xf32>, vector<8x128xf32> -> vector<8x128xf32>
    %19 = vector.broadcast %5 : vector<1x128xf32> to vector<8x128xf32>
    %20 = arith.addf %18, %19 : vector<8x128xf32>
    %21 = vector.shape_cast %16 : vector<64x128xf32> to vector<8x8x128xf32>
    %22 = vector.shape_cast %20 : vector<8x128xf32> to vector<1x8x128xf32>
    %23 = vector.broadcast %22 : vector<1x8x128xf32> to vector<8x8x128xf32>
    %24 = arith.addf %21, %23 : vector<8x8x128xf32>
    %c0_14 = arith.constant 0 : index
    %c0_15 = arith.constant 0 : index
    %c0_16 = arith.constant 0 : index
    %25 = vector.load %arg2[%c0_14, %c0_15, %c0_16] : memref<2x8x32xf32, #tpu.memory_space<vmem>>, vector<1x8x32xf32>
    %26 = vector.shape_cast %25 : vector<1x8x32xf32> to vector<8x32xf32>
    %c1_17 = arith.constant 1 : index
    %c0_18 = arith.constant 0 : index
    %c0_19 = arith.constant 0 : index
    %27 = vector.load %arg2[%c1_17, %c0_18, %c0_19] : memref<2x8x32xf32, #tpu.memory_space<vmem>>, vector<1x8x32xf32>
    %28 = vector.shape_cast %27 : vector<1x8x32xf32> to vector<8x32xf32>
    %29 = vector.extract_strided_slice %24 {offsets = [0, 0, 0], sizes = [1, 8, 128], strides = [1, 1, 1]} : vector<8x8x128xf32> to vector<1x8x128xf32>
    %30 = vector.shape_cast %29 : vector<1x8x128xf32> to vector<8x128xf32>
    %cst_20 = arith.constant dense<0.000000e+00> : vector<8x128xf32>
    %31 = tpu.matmul %26, %2, %cst_20 {dimension_numbers = #tpu.dot_dimension_numbers<[1], [0], [0], [1], [0, 0, 1, 1], [], []>} : vector<8x32xf32>, vector<32x128xf32>, vector<8x128xf32> -> vector<8x128xf32>
    %32 = arith.addf %30, %31 : vector<8x128xf32>
    %33 = vector.extract_strided_slice %32 {offsets = [0, 0], sizes = [8, 64], strides = [1, 1]} : vector<8x128xf32> to vector<8x64xf32>
    %34 = arith.negf %33 : vector<8x64xf32>
    %35 = math.exp %34 : vector<8x64xf32>
    %cst_21 = arith.constant 1.000000e+00 : f32
    %36 = vector.broadcast %cst_21 : f32 to vector<8x64xf32>
    %37 = arith.addf %36, %35 : vector<8x64xf32>
    %38 = arith.divf %36, %37 : vector<8x64xf32>
    %39 = vector.extract_strided_slice %38 {offsets = [0, 0], sizes = [8, 32], strides = [1, 1]} : vector<8x64xf32> to vector<8x32xf32>
    %40 = vector.extract_strided_slice %38 {offsets = [0, 32], sizes = [8, 32], strides = [1, 1]} : vector<8x64xf32> to vector<8x32xf32>
    %41 = vector.extract_strided_slice %32 {offsets = [0, 64], sizes = [8, 32], strides = [1, 1]} : vector<8x128xf32> to vector<8x32xf32>
    %42 = vector.extract_strided_slice %32 {offsets = [0, 96], sizes = [8, 32], strides = [1, 1]} : vector<8x128xf32> to vector<8x32xf32>
    %43 = arith.mulf %39, %42 : vector<8x32xf32>
    %44 = arith.addf %41, %43 : vector<8x32xf32>
    %45 = math.tanh %44 : vector<8x32xf32>
    %cst_22 = arith.constant 1.000000e+00 : f32
    %46 = vector.broadcast %cst_22 : f32 to vector<8x32xf32>
    %47 = arith.subf %46, %40 : vector<8x32xf32>
    %48 = arith.mulf %47, %45 : vector<8x32xf32>
    %49 = arith.mulf %40, %26 : vector<8x32xf32>
    %50 = arith.addf %48, %49 : vector<8x32xf32>
    %51 = tpu.concatenate %50, %28 in 1 : vector<8x32xf32>, vector<8x32xf32> -> vector<8x64xf32>
    %cst_23 = arith.constant dense<0.000000e+00> : vector<8x128xf32>
    %52 = tpu.matmul %51, %3, %cst_23 {dimension_numbers = #tpu.dot_dimension_numbers<[1], [0], [0], [1], [0, 0, 1, 1], [], []>} : vector<8x64xf32>, vector<64x128xf32>, vector<8x128xf32> -> vector<8x128xf32>
    %53 = arith.addf %52, %8 : vector<8x128xf32>
    %54 = vector.extract_strided_slice %53 {offsets = [0, 0], sizes = [8, 64], strides = [1, 1]} : vector<8x128xf32> to vector<8x64xf32>
    %55 = arith.negf %54 : vector<8x64xf32>
    %56 = math.exp %55 : vector<8x64xf32>
    %cst_24 = arith.constant 1.000000e+00 : f32
    %57 = vector.broadcast %cst_24 : f32 to vector<8x64xf32>
    %58 = arith.addf %57, %56 : vector<8x64xf32>
    %59 = arith.divf %57, %58 : vector<8x64xf32>
    %60 = vector.extract_strided_slice %59 {offsets = [0, 0], sizes = [8, 32], strides = [1, 1]} : vector<8x64xf32> to vector<8x32xf32>
    %61 = vector.extract_strided_slice %59 {offsets = [0, 32], sizes = [8, 32], strides = [1, 1]} : vector<8x64xf32> to vector<8x32xf32>
    %62 = vector.extract_strided_slice %53 {offsets = [0, 64], sizes = [8, 32], strides = [1, 1]} : vector<8x128xf32> to vector<8x32xf32>
    %63 = vector.extract_strided_slice %53 {offsets = [0, 96], sizes = [8, 32], strides = [1, 1]} : vector<8x128xf32> to vector<8x32xf32>
    %64 = arith.mulf %60, %63 : vector<8x32xf32>
    %65 = arith.addf %62, %64 : vector<8x32xf32>
    %66 = math.tanh %65 : vector<8x32xf32>
    %cst_25 = arith.constant 1.000000e+00 : f32
    %67 = vector.broadcast %cst_25 : f32 to vector<8x32xf32>
    %68 = arith.subf %67, %61 : vector<8x32xf32>
    %69 = arith.mulf %68, %66 : vector<8x32xf32>
    %70 = arith.mulf %61, %28 : vector<8x32xf32>
    %71 = arith.addf %69, %70 : vector<8x32xf32>
    %c0_26 = arith.constant 0 : index
    %c0_27 = arith.constant 0 : index
    %72 = vector.load %arg7[%c0_26, %c0_27] : memref<64x32xf32, #tpu.memory_space<vmem>>, vector<8x32xf32>
    tpu.vector_store %arg7[%c0_26, %c0_27], %71 {strides = array<i32>} : memref<64x32xf32, #tpu.memory_space<vmem>>, vector<8x32xf32>,
    %73 = vector.extract_strided_slice %24 {offsets = [1, 0, 0], sizes = [1, 8, 128], strides = [1, 1, 1]} : vector<8x8x128xf32> to vector<1x8x128xf32>
    %74 = vector.shape_cast %73 : vector<1x8x128xf32> to vector<8x128xf32>
    %cst_28 = arith.constant dense<0.000000e+00> : vector<8x128xf32>
    %75 = tpu.matmul %50, %2, %cst_28 {dimension_numbers = #tpu.dot_dimension_numbers<[1], [0], [0], [1], [0, 0, 1, 1], [], []>} : vector<8x32xf32>, vector<32x128xf32>, vector<8x128xf32> -> vector<8x128xf32>
    %76 = arith.addf %74, %75 : vector<8x128xf32>
    %77 = vector.extract_strided_slice %76 {offsets = [0, 0], sizes = [8, 64], strides = [1, 1]} : vector<8x128xf32> to vector<8x64xf32>
    %78 = arith.negf %77 : vector<8x64xf32>
    %79 = math.exp %78 : vector<8x64xf32>
    %cst_29 = arith.constant 1.000000e+00 : f32
    %80 = vector.broadcast %cst_29 : f32 to vector<8x64xf32>
    %81 = arith.addf %80, %79 : vector<8x64xf32>
    %82 = arith.divf %80, %81 : vector<8x64xf32>
    %83 = vector.extract_strided_slice %82 {offsets = [0, 0], sizes = [8, 32], strides = [1, 1]} : vector<8x64xf32> to vector<8x32xf32>
    %84 = vector.extract_strided_slice %82 {offsets = [0, 32], sizes = [8, 32], strides = [1, 1]} : vector<8x64xf32> to vector<8x32xf32>
    %85 = vector.extract_strided_slice %76 {offsets = [0, 64], sizes = [8, 32], strides = [1, 1]} : vector<8x128xf32> to vector<8x32xf32>
    %86 = vector.extract_strided_slice %76 {offsets = [0, 96], sizes = [8, 32], strides = [1, 1]} : vector<8x128xf32> to vector<8x32xf32>
    %87 = arith.mulf %83, %86 : vector<8x32xf32>
    %88 = arith.addf %85, %87 : vector<8x32xf32>
    %89 = math.tanh %88 : vector<8x32xf32>
    %cst_30 = arith.constant 1.000000e+00 : f32
    %90 = vector.broadcast %cst_30 : f32 to vector<8x32xf32>
    %91 = arith.subf %90, %84 : vector<8x32xf32>
    %92 = arith.mulf %91, %89 : vector<8x32xf32>
    %93 = arith.mulf %84, %50 : vector<8x32xf32>
    %94 = arith.addf %92, %93 : vector<8x32xf32>
    %95 = tpu.concatenate %94, %71 in 1 : vector<8x32xf32>, vector<8x32xf32> -> vector<8x64xf32>
    %cst_31 = arith.constant dense<0.000000e+00> : vector<8x128xf32>
    %96 = tpu.matmul %95, %3, %cst_31 {dimension_numbers = #tpu.dot_dimension_numbers<[1], [0], [0], [1], [0, 0, 1, 1], [], []>} : vector<8x64xf32>, vector<64x128xf32>, vector<8x128xf32> -> vector<8x128xf32>
    %97 = arith.addf %96, %8 : vector<8x128xf32>
    %98 = vector.extract_strided_slice %97 {offsets = [0, 0], sizes = [8, 64], strides = [1, 1]} : vector<8x128xf32> to vector<8x64xf32>
    %99 = arith.negf %98 : vector<8x64xf32>
    %100 = math.exp %99 : vector<8x64xf32>
    %cst_32 = arith.constant 1.000000e+00 : f32
    %101 = vector.broadcast %cst_32 : f32 to vector<8x64xf32>
    %102 = arith.addf %101, %100 : vector<8x64xf32>
    %103 = arith.divf %101, %102 : vector<8x64xf32>
    %104 = vector.extract_strided_slice %103 {offsets = [0, 0], sizes = [8, 32], strides = [1, 1]} : vector<8x64xf32> to vector<8x32xf32>
    %105 = vector.extract_strided_slice %103 {offsets = [0, 32], sizes = [8, 32], strides = [1, 1]} : vector<8x64xf32> to vector<8x32xf32>
    %106 = vector.extract_strided_slice %97 {offsets = [0, 64], sizes = [8, 32], strides = [1, 1]} : vector<8x128xf32> to vector<8x32xf32>
    %107 = vector.extract_strided_slice %97 {offsets = [0, 96], sizes = [8, 32], strides = [1, 1]} : vector<8x128xf32> to vector<8x32xf32>
    %108 = arith.mulf %104, %107 : vector<8x32xf32>
    %109 = arith.addf %106, %108 : vector<8x32xf32>
    %110 = math.tanh %109 : vector<8x32xf32>
    %cst_33 = arith.constant 1.000000e+00 : f32
    %111 = vector.broadcast %cst_33 : f32 to vector<8x32xf32>
    %112 = arith.subf %111, %105 : vector<8x32xf32>
    %113 = arith.mulf %112, %110 : vector<8x32xf32>
    %114 = arith.mulf %105, %71 : vector<8x32xf32>
    %115 = arith.addf %113, %114 : vector<8x32xf32>
    %c8 = arith.constant 8 : index
    %c0_34 = arith.constant 0 : index
    %116 = vector.load %arg7[%c8, %c0_34] : memref<64x32xf32, #tpu.memory_space<vmem>>, vector<8x32xf32>
    tpu.vector_store %arg7[%c8, %c0_34], %115 {strides = array<i32>} : memref<64x32xf32, #tpu.memory_space<vmem>>, vector<8x32xf32>,
    %117 = vector.extract_strided_slice %24 {offsets = [2, 0, 0], sizes = [1, 8, 128], strides = [1, 1, 1]} : vector<8x8x128xf32> to vector<1x8x128xf32>
    %118 = vector.shape_cast %117 : vector<1x8x128xf32> to vector<8x128xf32>
    %cst_35 = arith.constant dense<0.000000e+00> : vector<8x128xf32>
    %119 = tpu.matmul %94, %2, %cst_35 {dimension_numbers = #tpu.dot_dimension_numbers<[1], [0], [0], [1], [0, 0, 1, 1], [], []>} : vector<8x32xf32>, vector<32x128xf32>, vector<8x128xf32> -> vector<8x128xf32>
    %120 = arith.addf %118, %119 : vector<8x128xf32>
    %121 = vector.extract_strided_slice %120 {offsets = [0, 0], sizes = [8, 64], strides = [1, 1]} : vector<8x128xf32> to vector<8x64xf32>
    %122 = arith.negf %121 : vector<8x64xf32>
    %123 = math.exp %122 : vector<8x64xf32>
    %cst_36 = arith.constant 1.000000e+00 : f32
    %124 = vector.broadcast %cst_36 : f32 to vector<8x64xf32>
    %125 = arith.addf %124, %123 : vector<8x64xf32>
    %126 = arith.divf %124, %125 : vector<8x64xf32>
    %127 = vector.extract_strided_slice %126 {offsets = [0, 0], sizes = [8, 32], strides = [1, 1]} : vector<8x64xf32> to vector<8x32xf32>
    %128 = vector.extract_strided_slice %126 {offsets = [0, 32], sizes = [8, 32], strides = [1, 1]} : vector<8x64xf32> to vector<8x32xf32>
    %129 = vector.extract_strided_slice %120 {offsets = [0, 64], sizes = [8, 32], strides = [1, 1]} : vector<8x128xf32> to vector<8x32xf32>
    %130 = vector.extract_strided_slice %120 {offsets = [0, 96], sizes = [8, 32], strides = [1, 1]} : vector<8x128xf32> to vector<8x32xf32>
    %131 = arith.mulf %127, %130 : vector<8x32xf32>
    %132 = arith.addf %129, %131 : vector<8x32xf32>
    %133 = math.tanh %132 : vector<8x32xf32>
    %cst_37 = arith.constant 1.000000e+00 : f32
    %134 = vector.broadcast %cst_37 : f32 to vector<8x32xf32>
    %135 = arith.subf %134, %128 : vector<8x32xf32>
    %136 = arith.mulf %135, %133 : vector<8x32xf32>
    %137 = arith.mulf %128, %94 : vector<8x32xf32>
    %138 = arith.addf %136, %137 : vector<8x32xf32>
    %139 = tpu.concatenate %138, %115 in 1 : vector<8x32xf32>, vector<8x32xf32> -> vector<8x64xf32>
    %cst_38 = arith.constant dense<0.000000e+00> : vector<8x128xf32>
    %140 = tpu.matmul %139, %3, %cst_38 {dimension_numbers = #tpu.dot_dimension_numbers<[1], [0], [0], [1], [0, 0, 1, 1], [], []>} : vector<8x64xf32>, vector<64x128xf32>, vector<8x128xf32> -> vector<8x128xf32>
    %141 = arith.addf %140, %8 : vector<8x128xf32>
    %142 = vector.extract_strided_slice %141 {offsets = [0, 0], sizes = [8, 64], strides = [1, 1]} : vector<8x128xf32> to vector<8x64xf32>
    %143 = arith.negf %142 : vector<8x64xf32>
    %144 = math.exp %143 : vector<8x64xf32>
    %cst_39 = arith.constant 1.000000e+00 : f32
    %145 = vector.broadcast %cst_39 : f32 to vector<8x64xf32>
    %146 = arith.addf %145, %144 : vector<8x64xf32>
    %147 = arith.divf %145, %146 : vector<8x64xf32>
    %148 = vector.extract_strided_slice %147 {offsets = [0, 0], sizes = [8, 32], strides = [1, 1]} : vector<8x64xf32> to vector<8x32xf32>
    %149 = vector.extract_strided_slice %147 {offsets = [0, 32], sizes = [8, 32], strides = [1, 1]} : vector<8x64xf32> to vector<8x32xf32>
    %150 = vector.extract_strided_slice %141 {offsets = [0, 64], sizes = [8, 32], strides = [1, 1]} : vector<8x128xf32> to vector<8x32xf32>
    %151 = vector.extract_strided_slice %141 {offsets = [0, 96], sizes = [8, 32], strides = [1, 1]} : vector<8x128xf32> to vector<8x32xf32>
    %152 = arith.mulf %148, %151 : vector<8x32xf32>
    %153 = arith.addf %150, %152 : vector<8x32xf32>
    %154 = math.tanh %153 : vector<8x32xf32>
    %cst_40 = arith.constant 1.000000e+00 : f32
    %155 = vector.broadcast %cst_40 : f32 to vector<8x32xf32>
    %156 = arith.subf %155, %149 : vector<8x32xf32>
    %157 = arith.mulf %156, %154 : vector<8x32xf32>
    %158 = arith.mulf %149, %115 : vector<8x32xf32>
    %159 = arith.addf %157, %158 : vector<8x32xf32>
    %c16 = arith.constant 16 : index
    %c0_41 = arith.constant 0 : index
    %160 = vector.load %arg7[%c16, %c0_41] : memref<64x32xf32, #tpu.memory_space<vmem>>, vector<8x32xf32>
    tpu.vector_store %arg7[%c16, %c0_41], %159 {strides = array<i32>} : memref<64x32xf32, #tpu.memory_space<vmem>>, vector<8x32xf32>,
    %161 = vector.extract_strided_slice %24 {offsets = [3, 0, 0], sizes = [1, 8, 128], strides = [1, 1, 1]} : vector<8x8x128xf32> to vector<1x8x128xf32>
    %162 = vector.shape_cast %161 : vector<1x8x128xf32> to vector<8x128xf32>
    %cst_42 = arith.constant dense<0.000000e+00> : vector<8x128xf32>
    %163 = tpu.matmul %138, %2, %cst_42 {dimension_numbers = #tpu.dot_dimension_numbers<[1], [0], [0], [1], [0, 0, 1, 1], [], []>} : vector<8x32xf32>, vector<32x128xf32>, vector<8x128xf32> -> vector<8x128xf32>
    %164 = arith.addf %162, %163 : vector<8x128xf32>
    %165 = vector.extract_strided_slice %164 {offsets = [0, 0], sizes = [8, 64], strides = [1, 1]} : vector<8x128xf32> to vector<8x64xf32>
    %166 = arith.negf %165 : vector<8x64xf32>
    %167 = math.exp %166 : vector<8x64xf32>
    %cst_43 = arith.constant 1.000000e+00 : f32
    %168 = vector.broadcast %cst_43 : f32 to vector<8x64xf32>
    %169 = arith.addf %168, %167 : vector<8x64xf32>
    %170 = arith.divf %168, %169 : vector<8x64xf32>
    %171 = vector.extract_strided_slice %170 {offsets = [0, 0], sizes = [8, 32], strides = [1, 1]} : vector<8x64xf32> to vector<8x32xf32>
    %172 = vector.extract_strided_slice %170 {offsets = [0, 32], sizes = [8, 32], strides = [1, 1]} : vector<8x64xf32> to vector<8x32xf32>
    %173 = vector.extract_strided_slice %164 {offsets = [0, 64], sizes = [8, 32], strides = [1, 1]} : vector<8x128xf32> to vector<8x32xf32>
    %174 = vector.extract_strided_slice %164 {offsets = [0, 96], sizes = [8, 32], strides = [1, 1]} : vector<8x128xf32> to vector<8x32xf32>
    %175 = arith.mulf %171, %174 : vector<8x32xf32>
    %176 = arith.addf %173, %175 : vector<8x32xf32>
    %177 = math.tanh %176 : vector<8x32xf32>
    %cst_44 = arith.constant 1.000000e+00 : f32
    %178 = vector.broadcast %cst_44 : f32 to vector<8x32xf32>
    %179 = arith.subf %178, %172 : vector<8x32xf32>
    %180 = arith.mulf %179, %177 : vector<8x32xf32>
    %181 = arith.mulf %172, %138 : vector<8x32xf32>
    %182 = arith.addf %180, %181 : vector<8x32xf32>
    %183 = tpu.concatenate %182, %159 in 1 : vector<8x32xf32>, vector<8x32xf32> -> vector<8x64xf32>
    %cst_45 = arith.constant dense<0.000000e+00> : vector<8x128xf32>
    %184 = tpu.matmul %183, %3, %cst_45 {dimension_numbers = #tpu.dot_dimension_numbers<[1], [0], [0], [1], [0, 0, 1, 1], [], []>} : vector<8x64xf32>, vector<64x128xf32>, vector<8x128xf32> -> vector<8x128xf32>
    %185 = arith.addf %184, %8 : vector<8x128xf32>
    %186 = vector.extract_strided_slice %185 {offsets = [0, 0], sizes = [8, 64], strides = [1, 1]} : vector<8x128xf32> to vector<8x64xf32>
    %187 = arith.negf %186 : vector<8x64xf32>
    %188 = math.exp %187 : vector<8x64xf32>
    %cst_46 = arith.constant 1.000000e+00 : f32
    %189 = vector.broadcast %cst_46 : f32 to vector<8x64xf32>
    %190 = arith.addf %189, %188 : vector<8x64xf32>
    %191 = arith.divf %189, %190 : vector<8x64xf32>
    %192 = vector.extract_strided_slice %191 {offsets = [0, 0], sizes = [8, 32], strides = [1, 1]} : vector<8x64xf32> to vector<8x32xf32>
    %193 = vector.extract_strided_slice %191 {offsets = [0, 32], sizes = [8, 32], strides = [1, 1]} : vector<8x64xf32> to vector<8x32xf32>
    %194 = vector.extract_strided_slice %185 {offsets = [0, 64], sizes = [8, 32], strides = [1, 1]} : vector<8x128xf32> to vector<8x32xf32>
    %195 = vector.extract_strided_slice %185 {offsets = [0, 96], sizes = [8, 32], strides = [1, 1]} : vector<8x128xf32> to vector<8x32xf32>
    %196 = arith.mulf %192, %195 : vector<8x32xf32>
    %197 = arith.addf %194, %196 : vector<8x32xf32>
    %198 = math.tanh %197 : vector<8x32xf32>
    %cst_47 = arith.constant 1.000000e+00 : f32
    %199 = vector.broadcast %cst_47 : f32 to vector<8x32xf32>
    %200 = arith.subf %199, %193 : vector<8x32xf32>
    %201 = arith.mulf %200, %198 : vector<8x32xf32>
    %202 = arith.mulf %193, %159 : vector<8x32xf32>
    %203 = arith.addf %201, %202 : vector<8x32xf32>
    %c24 = arith.constant 24 : index
    %c0_48 = arith.constant 0 : index
    %204 = vector.load %arg7[%c24, %c0_48] : memref<64x32xf32, #tpu.memory_space<vmem>>, vector<8x32xf32>
    tpu.vector_store %arg7[%c24, %c0_48], %203 {strides = array<i32>} : memref<64x32xf32, #tpu.memory_space<vmem>>, vector<8x32xf32>,
    %205 = vector.extract_strided_slice %24 {offsets = [4, 0, 0], sizes = [1, 8, 128], strides = [1, 1, 1]} : vector<8x8x128xf32> to vector<1x8x128xf32>
    %206 = vector.shape_cast %205 : vector<1x8x128xf32> to vector<8x128xf32>
    %cst_49 = arith.constant dense<0.000000e+00> : vector<8x128xf32>
    %207 = tpu.matmul %182, %2, %cst_49 {dimension_numbers = #tpu.dot_dimension_numbers<[1], [0], [0], [1], [0, 0, 1, 1], [], []>} : vector<8x32xf32>, vector<32x128xf32>, vector<8x128xf32> -> vector<8x128xf32>
    %208 = arith.addf %206, %207 : vector<8x128xf32>
    %209 = vector.extract_strided_slice %208 {offsets = [0, 0], sizes = [8, 64], strides = [1, 1]} : vector<8x128xf32> to vector<8x64xf32>
    %210 = arith.negf %209 : vector<8x64xf32>
    %211 = math.exp %210 : vector<8x64xf32>
    %cst_50 = arith.constant 1.000000e+00 : f32
    %212 = vector.broadcast %cst_50 : f32 to vector<8x64xf32>
    %213 = arith.addf %212, %211 : vector<8x64xf32>
    %214 = arith.divf %212, %213 : vector<8x64xf32>
    %215 = vector.extract_strided_slice %214 {offsets = [0, 0], sizes = [8, 32], strides = [1, 1]} : vector<8x64xf32> to vector<8x32xf32>
    %216 = vector.extract_strided_slice %214 {offsets = [0, 32], sizes = [8, 32], strides = [1, 1]} : vector<8x64xf32> to vector<8x32xf32>
    %217 = vector.extract_strided_slice %208 {offsets = [0, 64], sizes = [8, 32], strides = [1, 1]} : vector<8x128xf32> to vector<8x32xf32>
    %218 = vector.extract_strided_slice %208 {offsets = [0, 96], sizes = [8, 32], strides = [1, 1]} : vector<8x128xf32> to vector<8x32xf32>
    %219 = arith.mulf %215, %218 : vector<8x32xf32>
    %220 = arith.addf %217, %219 : vector<8x32xf32>
    %221 = math.tanh %220 : vector<8x32xf32>
    %cst_51 = arith.constant 1.000000e+00 : f32
    %222 = vector.broadcast %cst_51 : f32 to vector<8x32xf32>
    %223 = arith.subf %222, %216 : vector<8x32xf32>
    %224 = arith.mulf %223, %221 : vector<8x32xf32>
    %225 = arith.mulf %216, %182 : vector<8x32xf32>
    %226 = arith.addf %224, %225 : vector<8x32xf32>
    %227 = tpu.concatenate %226, %203 in 1 : vector<8x32xf32>, vector<8x32xf32> -> vector<8x64xf32>
    %cst_52 = arith.constant dense<0.000000e+00> : vector<8x128xf32>
    %228 = tpu.matmul %227, %3, %cst_52 {dimension_numbers = #tpu.dot_dimension_numbers<[1], [0], [0], [1], [0, 0, 1, 1], [], []>} : vector<8x64xf32>, vector<64x128xf32>, vector<8x128xf32> -> vector<8x128xf32>
    %229 = arith.addf %228, %8 : vector<8x128xf32>
    %230 = vector.extract_strided_slice %229 {offsets = [0, 0], sizes = [8, 64], strides = [1, 1]} : vector<8x128xf32> to vector<8x64xf32>
    %231 = arith.negf %230 : vector<8x64xf32>
    %232 = math.exp %231 : vector<8x64xf32>
    %cst_53 = arith.constant 1.000000e+00 : f32
    %233 = vector.broadcast %cst_53 : f32 to vector<8x64xf32>
    %234 = arith.addf %233, %232 : vector<8x64xf32>
    %235 = arith.divf %233, %234 : vector<8x64xf32>
    %236 = vector.extract_strided_slice %235 {offsets = [0, 0], sizes = [8, 32], strides = [1, 1]} : vector<8x64xf32> to vector<8x32xf32>
    %237 = vector.extract_strided_slice %235 {offsets = [0, 32], sizes = [8, 32], strides = [1, 1]} : vector<8x64xf32> to vector<8x32xf32>
    %238 = vector.extract_strided_slice %229 {offsets = [0, 64], sizes = [8, 32], strides = [1, 1]} : vector<8x128xf32> to vector<8x32xf32>
    %239 = vector.extract_strided_slice %229 {offsets = [0, 96], sizes = [8, 32], strides = [1, 1]} : vector<8x128xf32> to vector<8x32xf32>
    %240 = arith.mulf %236, %239 : vector<8x32xf32>
    %241 = arith.addf %238, %240 : vector<8x32xf32>
    %242 = math.tanh %241 : vector<8x32xf32>
    %cst_54 = arith.constant 1.000000e+00 : f32
    %243 = vector.broadcast %cst_54 : f32 to vector<8x32xf32>
    %244 = arith.subf %243, %237 : vector<8x32xf32>
    %245 = arith.mulf %244, %242 : vector<8x32xf32>
    %246 = arith.mulf %237, %203 : vector<8x32xf32>
    %247 = arith.addf %245, %246 : vector<8x32xf32>
    %c32_55 = arith.constant 32 : index
    %c0_56 = arith.constant 0 : index
    %248 = vector.load %arg7[%c32_55, %c0_56] : memref<64x32xf32, #tpu.memory_space<vmem>>, vector<8x32xf32>
    tpu.vector_store %arg7[%c32_55, %c0_56], %247 {strides = array<i32>} : memref<64x32xf32, #tpu.memory_space<vmem>>, vector<8x32xf32>,
    %249 = vector.extract_strided_slice %24 {offsets = [5, 0, 0], sizes = [1, 8, 128], strides = [1, 1, 1]} : vector<8x8x128xf32> to vector<1x8x128xf32>
    %250 = vector.shape_cast %249 : vector<1x8x128xf32> to vector<8x128xf32>
    %cst_57 = arith.constant dense<0.000000e+00> : vector<8x128xf32>
    %251 = tpu.matmul %226, %2, %cst_57 {dimension_numbers = #tpu.dot_dimension_numbers<[1], [0], [0], [1], [0, 0, 1, 1], [], []>} : vector<8x32xf32>, vector<32x128xf32>, vector<8x128xf32> -> vector<8x128xf32>
    %252 = arith.addf %250, %251 : vector<8x128xf32>
    %253 = vector.extract_strided_slice %252 {offsets = [0, 0], sizes = [8, 64], strides = [1, 1]} : vector<8x128xf32> to vector<8x64xf32>
    %254 = arith.negf %253 : vector<8x64xf32>
    %255 = math.exp %254 : vector<8x64xf32>
    %cst_58 = arith.constant 1.000000e+00 : f32
    %256 = vector.broadcast %cst_58 : f32 to vector<8x64xf32>
    %257 = arith.addf %256, %255 : vector<8x64xf32>
    %258 = arith.divf %256, %257 : vector<8x64xf32>
    %259 = vector.extract_strided_slice %258 {offsets = [0, 0], sizes = [8, 32], strides = [1, 1]} : vector<8x64xf32> to vector<8x32xf32>
    %260 = vector.extract_strided_slice %258 {offsets = [0, 32], sizes = [8, 32], strides = [1, 1]} : vector<8x64xf32> to vector<8x32xf32>
    %261 = vector.extract_strided_slice %252 {offsets = [0, 64], sizes = [8, 32], strides = [1, 1]} : vector<8x128xf32> to vector<8x32xf32>
    %262 = vector.extract_strided_slice %252 {offsets = [0, 96], sizes = [8, 32], strides = [1, 1]} : vector<8x128xf32> to vector<8x32xf32>
    %263 = arith.mulf %259, %262 : vector<8x32xf32>
    %264 = arith.addf %261, %263 : vector<8x32xf32>
    %265 = math.tanh %264 : vector<8x32xf32>
    %cst_59 = arith.constant 1.000000e+00 : f32
    %266 = vector.broadcast %cst_59 : f32 to vector<8x32xf32>
    %267 = arith.subf %266, %260 : vector<8x32xf32>
    %268 = arith.mulf %267, %265 : vector<8x32xf32>
    %269 = arith.mulf %260, %226 : vector<8x32xf32>
    %270 = arith.addf %268, %269 : vector<8x32xf32>
    %271 = tpu.concatenate %270, %247 in 1 : vector<8x32xf32>, vector<8x32xf32> -> vector<8x64xf32>
    %cst_60 = arith.constant dense<0.000000e+00> : vector<8x128xf32>
    %272 = tpu.matmul %271, %3, %cst_60 {dimension_numbers = #tpu.dot_dimension_numbers<[1], [0], [0], [1], [0, 0, 1, 1], [], []>} : vector<8x64xf32>, vector<64x128xf32>, vector<8x128xf32> -> vector<8x128xf32>
    %273 = arith.addf %272, %8 : vector<8x128xf32>
    %274 = vector.extract_strided_slice %273 {offsets = [0, 0], sizes = [8, 64], strides = [1, 1]} : vector<8x128xf32> to vector<8x64xf32>
    %275 = arith.negf %274 : vector<8x64xf32>
    %276 = math.exp %275 : vector<8x64xf32>
    %cst_61 = arith.constant 1.000000e+00 : f32
    %277 = vector.broadcast %cst_61 : f32 to vector<8x64xf32>
    %278 = arith.addf %277, %276 : vector<8x64xf32>
    %279 = arith.divf %277, %278 : vector<8x64xf32>
    %280 = vector.extract_strided_slice %279 {offsets = [0, 0], sizes = [8, 32], strides = [1, 1]} : vector<8x64xf32> to vector<8x32xf32>
    %281 = vector.extract_strided_slice %279 {offsets = [0, 32], sizes = [8, 32], strides = [1, 1]} : vector<8x64xf32> to vector<8x32xf32>
    %282 = vector.extract_strided_slice %273 {offsets = [0, 64], sizes = [8, 32], strides = [1, 1]} : vector<8x128xf32> to vector<8x32xf32>
    %283 = vector.extract_strided_slice %273 {offsets = [0, 96], sizes = [8, 32], strides = [1, 1]} : vector<8x128xf32> to vector<8x32xf32>
    %284 = arith.mulf %280, %283 : vector<8x32xf32>
    %285 = arith.addf %282, %284 : vector<8x32xf32>
    %286 = math.tanh %285 : vector<8x32xf32>
    %cst_62 = arith.constant 1.000000e+00 : f32
    %287 = vector.broadcast %cst_62 : f32 to vector<8x32xf32>
    %288 = arith.subf %287, %281 : vector<8x32xf32>
    %289 = arith.mulf %288, %286 : vector<8x32xf32>
    %290 = arith.mulf %281, %247 : vector<8x32xf32>
    %291 = arith.addf %289, %290 : vector<8x32xf32>
    %c40 = arith.constant 40 : index
    %c0_63 = arith.constant 0 : index
    %292 = vector.load %arg7[%c40, %c0_63] : memref<64x32xf32, #tpu.memory_space<vmem>>, vector<8x32xf32>
    tpu.vector_store %arg7[%c40, %c0_63], %291 {strides = array<i32>} : memref<64x32xf32, #tpu.memory_space<vmem>>, vector<8x32xf32>,
    %293 = vector.extract_strided_slice %24 {offsets = [6, 0, 0], sizes = [1, 8, 128], strides = [1, 1, 1]} : vector<8x8x128xf32> to vector<1x8x128xf32>
    %294 = vector.shape_cast %293 : vector<1x8x128xf32> to vector<8x128xf32>
    %cst_64 = arith.constant dense<0.000000e+00> : vector<8x128xf32>
    %295 = tpu.matmul %270, %2, %cst_64 {dimension_numbers = #tpu.dot_dimension_numbers<[1], [0], [0], [1], [0, 0, 1, 1], [], []>} : vector<8x32xf32>, vector<32x128xf32>, vector<8x128xf32> -> vector<8x128xf32>
    %296 = arith.addf %294, %295 : vector<8x128xf32>
    %297 = vector.extract_strided_slice %296 {offsets = [0, 0], sizes = [8, 64], strides = [1, 1]} : vector<8x128xf32> to vector<8x64xf32>
    %298 = arith.negf %297 : vector<8x64xf32>
    %299 = math.exp %298 : vector<8x64xf32>
    %cst_65 = arith.constant 1.000000e+00 : f32
    %300 = vector.broadcast %cst_65 : f32 to vector<8x64xf32>
    %301 = arith.addf %300, %299 : vector<8x64xf32>
    %302 = arith.divf %300, %301 : vector<8x64xf32>
    %303 = vector.extract_strided_slice %302 {offsets = [0, 0], sizes = [8, 32], strides = [1, 1]} : vector<8x64xf32> to vector<8x32xf32>
    %304 = vector.extract_strided_slice %302 {offsets = [0, 32], sizes = [8, 32], strides = [1, 1]} : vector<8x64xf32> to vector<8x32xf32>
    %305 = vector.extract_strided_slice %296 {offsets = [0, 64], sizes = [8, 32], strides = [1, 1]} : vector<8x128xf32> to vector<8x32xf32>
    %306 = vector.extract_strided_slice %296 {offsets = [0, 96], sizes = [8, 32], strides = [1, 1]} : vector<8x128xf32> to vector<8x32xf32>
    %307 = arith.mulf %303, %306 : vector<8x32xf32>
    %308 = arith.addf %305, %307 : vector<8x32xf32>
    %309 = math.tanh %308 : vector<8x32xf32>
    %cst_66 = arith.constant 1.000000e+00 : f32
    %310 = vector.broadcast %cst_66 : f32 to vector<8x32xf32>
    %311 = arith.subf %310, %304 : vector<8x32xf32>
    %312 = arith.mulf %311, %309 : vector<8x32xf32>
    %313 = arith.mulf %304, %270 : vector<8x32xf32>
    %314 = arith.addf %312, %313 : vector<8x32xf32>
    %315 = tpu.concatenate %314, %291 in 1 : vector<8x32xf32>, vector<8x32xf32> -> vector<8x64xf32>
    %cst_67 = arith.constant dense<0.000000e+00> : vector<8x128xf32>
    %316 = tpu.matmul %315, %3, %cst_67 {dimension_numbers = #tpu.dot_dimension_numbers<[1], [0], [0], [1], [0, 0, 1, 1], [], []>} : vector<8x64xf32>, vector<64x128xf32>, vector<8x128xf32> -> vector<8x128xf32>
    %317 = arith.addf %316, %8 : vector<8x128xf32>
    %318 = vector.extract_strided_slice %317 {offsets = [0, 0], sizes = [8, 64], strides = [1, 1]} : vector<8x128xf32> to vector<8x64xf32>
    %319 = arith.negf %318 : vector<8x64xf32>
    %320 = math.exp %319 : vector<8x64xf32>
    %cst_68 = arith.constant 1.000000e+00 : f32
    %321 = vector.broadcast %cst_68 : f32 to vector<8x64xf32>
    %322 = arith.addf %321, %320 : vector<8x64xf32>
    %323 = arith.divf %321, %322 : vector<8x64xf32>
    %324 = vector.extract_strided_slice %323 {offsets = [0, 0], sizes = [8, 32], strides = [1, 1]} : vector<8x64xf32> to vector<8x32xf32>
    %325 = vector.extract_strided_slice %323 {offsets = [0, 32], sizes = [8, 32], strides = [1, 1]} : vector<8x64xf32> to vector<8x32xf32>
    %326 = vector.extract_strided_slice %317 {offsets = [0, 64], sizes = [8, 32], strides = [1, 1]} : vector<8x128xf32> to vector<8x32xf32>
    %327 = vector.extract_strided_slice %317 {offsets = [0, 96], sizes = [8, 32], strides = [1, 1]} : vector<8x128xf32> to vector<8x32xf32>
    %328 = arith.mulf %324, %327 : vector<8x32xf32>
    %329 = arith.addf %326, %328 : vector<8x32xf32>
    %330 = math.tanh %329 : vector<8x32xf32>
    %cst_69 = arith.constant 1.000000e+00 : f32
    %331 = vector.broadcast %cst_69 : f32 to vector<8x32xf32>
    %332 = arith.subf %331, %325 : vector<8x32xf32>
    %333 = arith.mulf %332, %330 : vector<8x32xf32>
    %334 = arith.mulf %325, %291 : vector<8x32xf32>
    %335 = arith.addf %333, %334 : vector<8x32xf32>
    %c48 = arith.constant 48 : index
    %c0_70 = arith.constant 0 : index
    %336 = vector.load %arg7[%c48, %c0_70] : memref<64x32xf32, #tpu.memory_space<vmem>>, vector<8x32xf32>
    tpu.vector_store %arg7[%c48, %c0_70], %335 {strides = array<i32>} : memref<64x32xf32, #tpu.memory_space<vmem>>, vector<8x32xf32>,
    %337 = vector.extract_strided_slice %24 {offsets = [7, 0, 0], sizes = [1, 8, 128], strides = [1, 1, 1]} : vector<8x8x128xf32> to vector<1x8x128xf32>
    %338 = vector.shape_cast %337 : vector<1x8x128xf32> to vector<8x128xf32>
    %cst_71 = arith.constant dense<0.000000e+00> : vector<8x128xf32>
    %339 = tpu.matmul %314, %2, %cst_71 {dimension_numbers = #tpu.dot_dimension_numbers<[1], [0], [0], [1], [0, 0, 1, 1], [], []>} : vector<8x32xf32>, vector<32x128xf32>, vector<8x128xf32> -> vector<8x128xf32>
    %340 = arith.addf %338, %339 : vector<8x128xf32>
    %341 = vector.extract_strided_slice %340 {offsets = [0, 0], sizes = [8, 64], strides = [1, 1]} : vector<8x128xf32> to vector<8x64xf32>
    %342 = arith.negf %341 : vector<8x64xf32>
    %343 = math.exp %342 : vector<8x64xf32>
    %cst_72 = arith.constant 1.000000e+00 : f32
    %344 = vector.broadcast %cst_72 : f32 to vector<8x64xf32>
    %345 = arith.addf %344, %343 : vector<8x64xf32>
    %346 = arith.divf %344, %345 : vector<8x64xf32>
    %347 = vector.extract_strided_slice %346 {offsets = [0, 0], sizes = [8, 32], strides = [1, 1]} : vector<8x64xf32> to vector<8x32xf32>
    %348 = vector.extract_strided_slice %346 {offsets = [0, 32], sizes = [8, 32], strides = [1, 1]} : vector<8x64xf32> to vector<8x32xf32>
    %349 = vector.extract_strided_slice %340 {offsets = [0, 64], sizes = [8, 32], strides = [1, 1]} : vector<8x128xf32> to vector<8x32xf32>
    %350 = vector.extract_strided_slice %340 {offsets = [0, 96], sizes = [8, 32], strides = [1, 1]} : vector<8x128xf32> to vector<8x32xf32>
    %351 = arith.mulf %347, %350 : vector<8x32xf32>
    %352 = arith.addf %349, %351 : vector<8x32xf32>
    %353 = math.tanh %352 : vector<8x32xf32>
    %cst_73 = arith.constant 1.000000e+00 : f32
    %354 = vector.broadcast %cst_73 : f32 to vector<8x32xf32>
    %355 = arith.subf %354, %348 : vector<8x32xf32>
    %356 = arith.mulf %355, %353 : vector<8x32xf32>
    %357 = arith.mulf %348, %314 : vector<8x32xf32>
    %358 = arith.addf %356, %357 : vector<8x32xf32>
    %359 = tpu.concatenate %358, %335 in 1 : vector<8x32xf32>, vector<8x32xf32> -> vector<8x64xf32>
    %cst_74 = arith.constant dense<0.000000e+00> : vector<8x128xf32>
    %360 = tpu.matmul %359, %3, %cst_74 {dimension_numbers = #tpu.dot_dimension_numbers<[1], [0], [0], [1], [0, 0, 1, 1], [], []>} : vector<8x64xf32>, vector<64x128xf32>, vector<8x128xf32> -> vector<8x128xf32>
    %361 = arith.addf %360, %8 : vector<8x128xf32>
    %362 = vector.extract_strided_slice %361 {offsets = [0, 0], sizes = [8, 64], strides = [1, 1]} : vector<8x128xf32> to vector<8x64xf32>
    %363 = arith.negf %362 : vector<8x64xf32>
    %364 = math.exp %363 : vector<8x64xf32>
    %cst_75 = arith.constant 1.000000e+00 : f32
    %365 = vector.broadcast %cst_75 : f32 to vector<8x64xf32>
    %366 = arith.addf %365, %364 : vector<8x64xf32>
    %367 = arith.divf %365, %366 : vector<8x64xf32>
    %368 = vector.extract_strided_slice %367 {offsets = [0, 0], sizes = [8, 32], strides = [1, 1]} : vector<8x64xf32> to vector<8x32xf32>
    %369 = vector.extract_strided_slice %367 {offsets = [0, 32], sizes = [8, 32], strides = [1, 1]} : vector<8x64xf32> to vector<8x32xf32>
    %370 = vector.extract_strided_slice %361 {offsets = [0, 64], sizes = [8, 32], strides = [1, 1]} : vector<8x128xf32> to vector<8x32xf32>
    %371 = vector.extract_strided_slice %361 {offsets = [0, 96], sizes = [8, 32], strides = [1, 1]} : vector<8x128xf32> to vector<8x32xf32>
    %372 = arith.mulf %368, %371 : vector<8x32xf32>
    %373 = arith.addf %370, %372 : vector<8x32xf32>
    %374 = math.tanh %373 : vector<8x32xf32>
    %cst_76 = arith.constant 1.000000e+00 : f32
    %375 = vector.broadcast %cst_76 : f32 to vector<8x32xf32>
    %376 = arith.subf %375, %369 : vector<8x32xf32>
    %377 = arith.mulf %376, %374 : vector<8x32xf32>
    %378 = arith.mulf %369, %335 : vector<8x32xf32>
    %379 = arith.addf %377, %378 : vector<8x32xf32>
    %c56 = arith.constant 56 : index
    %c0_77 = arith.constant 0 : index
    %380 = vector.load %arg7[%c56, %c0_77] : memref<64x32xf32, #tpu.memory_space<vmem>>, vector<8x32xf32>
    tpu.vector_store %arg7[%c56, %c0_77], %379 {strides = array<i32>} : memref<64x32xf32, #tpu.memory_space<vmem>>, vector<8x32xf32>,
    %c0_78 = arith.constant 0 : index
    %c0_79 = arith.constant 0 : index
    %381 = vector.load %arg7[%c0_78, %c0_79] : memref<64x32xf32, #tpu.memory_space<vmem>>, vector<64x32xf32>
    %cst_80 = arith.constant dense<0.000000e+00> : vector<64x128xf32>
    %382 = tpu.matmul %381, %4, %cst_80 {dimension_numbers = #tpu.dot_dimension_numbers<[1], [0], [0], [1], [0, 0, 1, 1], [], []>} : vector<64x32xf32>, vector<32x128xf32>, vector<64x128xf32> -> vector<64x128xf32>
    %383 = vector.broadcast %9 : vector<1x128xf32> to vector<64x128xf32>
    %384 = arith.addf %382, %383 : vector<64x128xf32>
    %c0_81 = arith.constant 0 : index
    %c0_82 = arith.constant 0 : index
    %385 = vector.load %arg5[%c0_81, %c0_82] : memref<64x128xf32, #tpu.memory_space<vmem>>, vector<64x128xf32>
    tpu.vector_store %arg5[%c0_81, %c0_82], %384 {strides = array<i32>} : memref<64x128xf32, #tpu.memory_space<vmem>>, vector<64x128xf32>,
    %c0_83 = arith.constant 0 : index
    %c0_84 = arith.constant 0 : index
    %c0_85 = arith.constant 0 : index
    %386 = vector.load %arg6[%c0_83, %c0_84, %c0_85] : memref<2x8x32xf32, #tpu.memory_space<vmem>>, vector<1x8x32xf32>
    %387 = vector.shape_cast %386 : vector<1x8x32xf32> to vector<8x32xf32>
    %388 = vector.shape_cast %358 : vector<8x32xf32> to vector<1x8x32xf32>
    tpu.vector_store %arg6[%c0_83, %c0_84, %c0_85], %388 {strides = array<i32>} : memref<2x8x32xf32, #tpu.memory_space<vmem>>, vector<1x8x32xf32>,
    %c1_86 = arith.constant 1 : index
    %c0_87 = arith.constant 0 : index
    %c0_88 = arith.constant 0 : index
    %389 = vector.load %arg6[%c1_86, %c0_87, %c0_88] : memref<2x8x32xf32, #tpu.memory_space<vmem>>, vector<1x8x32xf32>
    %390 = vector.shape_cast %389 : vector<1x8x32xf32> to vector<8x32xf32>
    %391 = vector.shape_cast %379 : vector<8x32xf32> to vector<1x8x32xf32>
    tpu.vector_store %arg6[%c1_86, %c0_87, %c0_88], %391 {strides = array<i32>} : memref<2x8x32xf32, #tpu.memory_space<vmem>>, vector<1x8x32xf32>,
    return
  }
}

</mosaic_0001>

<bundles_post_ra>
// kernel: tpu_custom_call.1
= control target key start
LH: loop header
LB: loop body
LE: loop exit
PB: predicated region body
PF: predicated region fallthrough
CT: control target
= control target key end

     0   :  { %12 = vsyncpa [#allocation4], 0  ;;  %s3461_s0 = inlined_call_operand.vmem [shape: s32[64,1], index: 0, kind: input, shape index: {}]   ;;  %s3462_s1 = inlined_call_operand.vmem [shape: f32[8,32], index: 1, kind: input, shape index: {}]   ;;  %s3463_s2 = inlined_call_operand.vmem [shape: f32[2,8,32], index: 2, kind: input, shape index: {}]   ;;  %s3464_s3 = inlined_call_operand.hbm [shape: f32[192,128], index: 3, kind: input, shape index: {}]   ;;  %s3465_s4 = inlined_call_operand.vmem [shape: f32[8,128], index: 4, kind: input, shape index: {}]   ;;  %s3466_s5 = inlined_call_operand.hbm [shape: f32[64,128], index: 5, kind: output, shape index: {0}]   ;;  %s3467_s6 = inlined_call_operand.hbm [shape: f32[2,8,32], index: 6, kind: output, shape index: {1}]  }
   0x1   :  { %13 = vsyncpa [#allocation5], 0 }
   0x2   :  { %14 = vsyncpa [#allocation8], 0  ;;  %s2860_s21 = smov [#allocation3]  }
   0x3   :  { %s26_s22 = sshll.u32 %s2860_s21, 4  ;;  %s27_s22 = int_to_ptr.vmem [resolvable:$true] %s26_s22 }
   0x4   :  { %s2802_s23 = scalar_lea.vmem %s27_s22, 3072  ;;  %p2807_p1 = scmp.lt.s32.totalorder %s27_s22, %s27_s22 }
   0x5   :  { %p2803_p0 = scmp.ne.s32.totalorder %s27_s22, %s2802_s23  ;;  %p2808_p2 = scmp.lt.s32.totalorder %s2802_s23, %s2802_s23 }
   0x7   :  { %p2809_p3 = por %p2808_p2, %p2807_p1 }
   0x9   :  { %p2810_p4 = pnand %p2809_p3, %p2803_p0 }
   0xb   :  { %2813 = shalt.err (!%p2810_p4)
}
   0xc   :  { %s2861_s24 = smov 128   ;;  %s2862_s25 = smov 8  }
   0xd   :  { %32 = dma.hbm_to_vmem [thread:$0]  %s3464_s3, 3072, %s27_s22, [#allocation4], %s2861_s24, %s2861_s24, %s2862_s25  }
   0xe   :  { %2854 = dma.done.wait [#allocation4], 3072  }
   0xf   :  { %2855 = vsyncadd [#allocation4], 4294964224  ;;  %v2863_v0 = vmov 0   ;;  %v2864_v1 = vmov 0.0   ;;  %vm2865_vm0 = vmmov 0   ;;  %v69_v2 = vld [vmem:[%s3461_s0] sm:$0xff]  ;;  %v77_v18 = vlaneseq }
  0x10   :  { %2692 = vset.pattern.permute.xlu0 %v2863_v0  ;;  %2410 = vmatprep.subr.mxu1 %v2864_v1  ;;  %v45_v3 = vld [vmem:[#allocation3 + $0x38] sm:$0xff]  ;;  %v44_v4 = vld [vmem:[#allocation3 + $0x30] sm:$0xff]  ;;  %v70_v6 = vld [vmem:[%s3461_s0 + $0x8] sm:$0xff]  ;;  %vm127_vm1 = vcmask 261120   ;;  %s2866_s12 = smov 32   ;;  %s2867_s13 = smov 64  }
  0x11   :  { %2693 = vset.pattern.permute.xlu1 %v2863_v0  ;;  %2418 = vmatprep.mubr.msk.f32.mxu1 %vm2865_vm0, %v2864_v1  ;;  %v41_v5 = vld [vmem:[#allocation3 + $0x18] sm:$0xff]  ;;  %v43_v7 = vld [vmem:[#allocation3 + $0x28] sm:$0xff]  ;;  %v40_v8 = vld [vmem:[#allocation3 + $0x10] sm:$0xff]  ;;  %v2962_v19 = vand.u32 127, %v77_v18  ;;  %s2868_s14 = smov 96   ;;  %vm457_vm10 = vcmask 523264  }
  0x12   :  { %80 = vperm.xlu0 %2692, %v69_v2   ;;  %2411 = vmatpush3.msra.mxu1 %v45_v3  ;;  %v42_v9 = vld [vmem:[#allocation3 + $0x20] sm:$0xff]  ;;  %v39_v10 = vld [vmem:[#allocation3 + $0x8] sm:$0xff]  ;;  %v2927_v12 = vld [vmem:[#allocation3 + $0x58] sm:$0xff]  ;;  %s2869_s30 = smov [#allocation7]  }
  0x13   :  { %2412 = vmatprep.subr.mxu1 %v2864_v1  ;;  %2390 = vmatprep.subr.mxu0 %v41_v5  ;;  %v257_v11 = vld [vmem:[%s3462_s1] sm:$0xff]  ;;  %v2931_v14 = vld [vmem:[#allocation3 + $0x50] sm:$0xff]  ;;  %v2935_v15 = vld [vmem:[#allocation3 + $0x48] sm:$0xff]  ;;  %s2172_s7 = sshll.u32 %s2869_s30, 4  ;;  %s2173_s7 = int_to_ptr.vmem [resolvable:$true] %s2172_s7 }
  0x14   :  { %2413 = vmatpush3.msra.mxu1 %v44_v4  ;;  %2391 = vmatpush3.msra.mxu0 %v41_v5  ;;  %v38_v13 = vld [vmem:[#allocation3] sm:$0xff]  ;;  %v71_v54 = vld [vmem:[%s3461_s0 + $0x10] sm:$0xff]  ;;  %v72_v62 = vld [vmem:[%s3461_s0 + $0x18] sm:$0xff]  ;;  %s2814_s8 = scalar_lea.vmem %s2173_s7, 256  ;;  %p2819_p6 = scmp.lt.s32.totalorder %s2173_s7, %s2173_s7 }
  0x15   :  { %2414 = vmatprep.subr.mxu1 %v2864_v1  ;;  %2392 = vmatprep.subr.mxu0 %v40_v8  ;;  %v2939_v16 = vld [vmem:[#allocation3 + $0x40] sm:$0xff]  ;;  %v74_v63 = vld [vmem:[%s3461_s0 + $0x28] sm:$0xff]  ;;  %v75_v0 = vld [vmem:[%s3461_s0 + $0x30] sm:$0xff]  ;;  %p2815_p5 = scmp.ne.s32.totalorder %s2173_s7, %s2814_s8  ;;  %p2820_p7 = scmp.lt.s32.totalorder %s2814_s8, %s2814_s8 }
  0x16   :  { %83 = vperm.xlu0 %2692, %v70_v6   ;;  %2415 = vmatpush3.msra.mxu1 %v43_v7  ;;  %v343_v17 = vld [vmem:[%s3463_s2] sm:$0xff]  ;;  %v2207_v4 = vld [vmem:[%s3463_s2 + $0x8] sm:$0xff]  ;;  %v3026_v7 = vld [vmem:[#allocation3 + $0x98] sm:$0xff] }
  0x17   :  { %2416 = vmatprep.subr.mxu1 %v2864_v1  ;;  %2393 = vmatpush3.msra.mxu0 %v40_v8  ;;  %v2205_v28 = vld [vmem:[%s3465_s4] ss:$0 sm:$0xff]  ;;  %p2821_p8 = por %p2820_p7, %p2819_p6 }
  0x18   :  { %2417 = vmatpush3.msra.mxu1 %v42_v9  ;;  %2394 = vmatprep.subr.mxu0 %v39_v10  ;;  %v73_v55 = vld [vmem:[%s3461_s0 + $0x20] sm:$0xff]  ;;  %v3030_v9 = vld [vmem:[#allocation3 + $0x90] sm:$0xff] }
  0x19   :  { %2421 = vmatprep.subr.mxu1 %v2864_v1  ;;  %2419 = vmatmul.mubr.msk.f32.vlgmr.msra.gmra.mxu1 %vm127_vm1, %v257_v11  ;;  %v3036_v11 = vld [vmem:[#allocation3 + $0x80] sm:$0xff]  ;;  %p2822_p9 = pnand %p2821_p8, %p2815_p5 }
  0x1a   :  { %2422 = vmatpush3.msra.mxu1 %v2927_v12  ;;  %2395 = vmatpush3.msra.mxu0 %v39_v10  ;;  %v3032_v10 = vld [vmem:[#allocation3 + $0x88] sm:$0xff] }
  0x1b   :  { %2423 = vmatprep.subr.mxu1 %v2864_v1  ;;  %2396 = vmatprep.subr.mxu0 %v38_v13 }
  0x1c   :  { %2424 = vmatpush3.msra.mxu1 %v2931_v14  ;;  %2397 = vmatpush3.msra.mxu0 %v38_v13  ;;  %v3041_v13 = vld [vmem:[#allocation3 + $0x78] sm:$0xff] }
  0x1d   :  { %2425 = vmatprep.subr.mxu1 %v2864_v1  ;;  %2429 = vmatprep.mubr.msk.f32.mxu1 %vm2865_vm0, %v2864_v1 }
  0x1e   :  { %2426 = vmatpush3.msra.mxu1 %v2935_v15  ;;  %2432 = vmatprep.subr.mxu0 %v2864_v1 }
  0x1f   :  { %2427 = vmatprep.subr.mxu1 %v2864_v1 }
  0x20   :  { %2428 = vmatpush3.msra.mxu1 %v2939_v16 }
  0x21   :  { %2430 = vmatmul.mubr.msk.f32.vlgmr.msra.gmra.mxu1 %vm127_vm1, %v343_v17  ;;  %2451 = vmatprep.subr.mxu1 %v2864_v1 }
  0x22   :  { %2452 = vmatpush3.msra.mxu1 %v2927_v12  ;;  %2459 = vmatprep.mubr.msk.f32.mxu1 %vm2865_vm0, %v2864_v1 }
  0x23   :  { %2453 = vmatprep.subr.mxu1 %v2864_v1 }
  0x24   :  { %2454 = vmatpush3.msra.mxu1 %v2931_v14 }
  0x25   :  { %2455 = vmatprep.subr.mxu1 %v2864_v1 }
  0x26   :  { %2456 = vmatpush3.msra.mxu1 %v2935_v15 }
  0x27   :  { %2457 = vmatprep.subr.mxu1 %v2864_v1 }
  0x28   :  { %2458 = vmatpush3.msra.mxu1 %v2939_v16 }
  0x29   :  { %2481 = vmatprep.subr.mxu1 %v2864_v1 }
  0x8d   :  { %v81_v20 = vpop.permute.xlu0 %80 }
  0x8e   :  { %vm103_vm2 = vcmp.eq.s32.totalorder %v2962_v19, %v81_v20 }
  0x8f   :  { %v2189_v21 = vsel %vm103_vm2, 1.0, %v2864_v1 }
  0x90   :  { %2398 = vmatprep.mubr.msk.f32.mxu0 %vm127_vm1, %v2189_v21 }
  0x91   :  { %v84_v22 = vpop.permute.xlu0 %83 }
  0x92   :  { %vm104_vm3 = vcmp.eq.s32.totalorder %v2962_v19, %v84_v22 }
  0x93   :  { %v2190_v23 = vsel %vm104_vm3, 1.0, %v2864_v1 }
  0x94   :  { %2399 = vmatmul.mubr.msk.f32.vlgmr.msra.gmra.mxu0 %vm127_vm1, %v2190_v23  ;;  %v3053_v23 = vld [vmem:[#allocation3 + $0x70] sm:$0xff] }
  0x95   :  { %2433 = vmatpush3.msra.mxu0 %v3026_v7 }
  0x96   :  { %2434 = vmatprep.subr.mxu0 %v2864_v1 }
  0x97   :  { %2435 = vmatpush3.msra.mxu0 %v3030_v9 }
  0x98   :  { %2436 = vmatprep.subr.mxu0 %v2864_v1 }
  0x99   :  { %2437 = vmatpush3.msra.mxu0 %v3032_v10 }
  0x9a   :  { %2438 = vmatprep.subr.mxu0 %v2864_v1 }
  0x9b   :  { %2439 = vmatpush3.msra.mxu0 %v3036_v11 }
  0x9c   :  { %2440 = vmatprep.subr.mxu0 %v2864_v1 }
  0x9d   :  { %2441 = vmatpush3.msra.mxu0 %v3041_v13 }
  0x9e   :  { %2442 = vmatprep.subr.mxu0 %v2864_v1 }
  0x9f   :  { %2443 = vmatpush3.msra.mxu0 %v3053_v23 }
  0xa0   :  { %2444 = vmatprep.subr.mxu0 %v2864_v1 }
  0xd9   :  { %v331_v24 = vpop.f32.mrf.mxu1 }
  0xda   :  { %v2973_v30 = vadd.f32 %v2205_v28, %v331_v24  ;;  %v76_v24 = vld [vmem:[%s3461_s0 + $0x38] sm:$0xff] }
  0xdb   :  { %v2420_v25 = vpop.f32.mrf.mxu1 }
  0xe1   :  { %v415_v26 = vpop.f32.mrf.mxu1 }
  0xe3   :  { %v2431_v27 = vpop.f32.mrf.mxu1 }
  0xe4   :  { %v3065_v27 = vld [vmem:[#allocation3 + $0x60] sm:$0xff] }
 0x154   :  { %v2400_v29 = vpop.f32.mrf.mxu0 }
 0x155   :  { %v336_v50 = vadd.f32 %v2400_v29, %v2973_v30 }
 0x156   :  { %v218_v31 = vpop.f32.mrf.mxu0 }
 0x157   :  { %v335_v32 = vadd.f32 %v2973_v30, %v218_v31 }
 0x159   :  { %v419_v33 = vadd.f32 %v415_v26, %v335_v32  ;;  %v3062_v26 = vld [vmem:[#allocation3 + $0x68] sm:$0xff] }
 0x15a   :  { %2445 = vmatpush3.msra.mxu0 %v3062_v26 }
 0x15b   :  { %427 = vrot.lane.b32.xlu1 %v419_v33, %s2866_s12  ;;  %v2209_v34 = vmul.f32 -1.442695, %v419_v33  ;;  %2446 = vmatprep.subr.mxu0 %v2864_v1 }
 0x15c   :  { %2447 = vmatpush3.msra.mxu0 %v3065_v27 }
 0x15d   :  { %2694 = vpow2.f32 %v2209_v34  ;;  %2462 = vmatprep.subr.mxu0 %v2864_v1 }
 0x16a   :  { %v2695_v35 = vpop.eup %2694 }
 0x16b   :  { %v423_v36 = vadd.f32 1.0, %v2695_v35 }
 0x16d   :  { %2696 = vrcp.f32 %v423_v36 }
 0x17a   :  { %v2697_v37 = vpop.eup %2696 }
 0x17b   :  { %v437_v44 = vsub.f32 1.0, %v2697_v37 }
 0x1cd   :  { %v428_v38 = vpop.permute.xlu1 %427 }
 0x1ce   :  { %v430_v39 = vmul.f32 %v2697_v37, %v428_v38 }
 0x1d0   :  { %432 = vrot.lane.b32.xlu1 %v430_v39, %s2867_s13 }
 0x1d4   :  { %443 = vrot.lane.b32.xlu1 %v343_v17, %s2866_s12 }
 0x242   :  { %v433_v40 = vpop.permute.xlu1 %432 }
 0x243   :  { %v435_v41 = vadd.f32 %v433_v40, %v419_v33 }
 0x245   :  { %2698 = vtanh.f32 %v435_v41 }
 0x246   :  { %v444_v43 = vpop.permute.xlu1 %443 }
 0x247   :  { %v446_v46 = vmul.f32 %v2697_v37, %v444_v43 }
 0x252   :  { %v2699_v42 = vpop.eup %2698 }
 0x253   :  { %439 = vrot.lane.b32.xlu0 %v2699_v42, %s2868_s14 }
 0x2c5   :  { %v440_v45 = vpop.permute.xlu0 %439 }
 0x2c6   :  { %v442_v47 = vmul.f32 %v440_v45, %v437_v44 }
 0x2c8   :  { %v2980_v48 = vadd.f32 %v446_v46, %v442_v47  ;;  %v3145_v46 = vld [vmem:[%s3465_s4 + $0x1] ss:$0 sm:$0xff] }
 0x2ca   :  { %449 = vrot.lane.b32.xlu0 %v2980_v48, %s2868_s14 }
 0x33c   :  { %v2984_v49 = vpop.permute.xlu0 %449 }
 0x33d   :  { %2460 = vmatmul.mubr.msk.f32.vlgmr.msra.gmra.mxu1 %vm127_vm1, %v2984_v49 }
 0x33e   :  { %2482 = vmatpush3.msra.mxu1 %v2927_v12  ;;  %2489 = vmatprep.mubr.msk.f32.mxu1 %vm2865_vm0, %v2864_v1 }
 0x33f   :  { %2483 = vmatprep.subr.mxu1 %v2864_v1 }
 0x340   :  { %2484 = vmatpush3.msra.mxu1 %v2931_v14 }
 0x341   :  { %2485 = vmatprep.subr.mxu1 %v2864_v1 }
 0x342   :  { %2486 = vmatpush3.msra.mxu1 %v2935_v15 }
 0x343   :  { %2487 = vmatprep.subr.mxu1 %v2864_v1 }
 0x344   :  { %2488 = vmatpush3.msra.mxu1 %v2939_v16 }
 0x345   :  { %2492 = vmatprep.subr.mxu1 %v2864_v1 }
 0x3fd   :  { %v629_v51 = vpop.f32.mrf.mxu1 }
 0x3fe   :  { %v633_v52 = vadd.f32 %v629_v51, %v336_v50 }
 0x3ff   :  { %v2461_v53 = vpop.f32.mrf.mxu1 }
 0x400   :  { %641 = vrot.lane.b32.xlu1 %v633_v52, %s2866_s12  ;;  %v2213_v56 = vmul.f32 -1.442695, %v633_v52 }
 0x402   :  { %2700 = vpow2.f32 %v2213_v56 }
 0x404   :  { %86 = vperm.xlu1 %2693, %v71_v54  }
 0x408   :  { %92 = vperm.xlu1 %2693, %v73_v55  }
 0x40f   :  { %v2701_v57 = vpop.eup %2700 }
 0x410   :  { %v637_v58 = vadd.f32 1.0, %v2701_v57 }
 0x412   :  { %2702 = vrcp.f32 %v637_v58 }
 0x41f   :  { %v3006_v59 = vpop.eup %2702 }
 0x420   :  { %v651_v31 = vsub.f32 1.0, %v3006_v59  ;;  %v657_v33 = vmul.f32 %v3006_v59, %v2980_v48 }
 0x472   :  { %v642_v60 = vpop.permute.xlu1 %641 }
 0x473   :  { %v644_v61 = vmul.f32 %v3006_v59, %v642_v60 }
 0x475   :  { %646 = vrot.lane.b32.xlu0 %v644_v61, %s2867_s13 }
 0x479   :  { %89 = vperm.xlu0 %2692, %v72_v62  }
 0x47d   :  { %95 = vperm.xlu0 %2692, %v74_v63  }
 0x47f   :  { %v87_v2 = vpop.permute.xlu1 %86 }
 0x480   :  { %vm105_vm4 = vcmp.eq.s32.totalorder %v2962_v19, %v87_v2 }
 0x481   :  { %98 = vperm.xlu0 %2692, %v75_v0   ;;  %v2191_v3 = vsel %vm105_vm4, 1.0, %v2864_v1 }
 0x482   :  { %2401 = vmatprep.mubr.msk.f32.mxu0 %vm127_vm1, %v2191_v3 }
 0x483   :  { %v93_v8 = vpop.permute.xlu1 %92 }
 0x484   :  { %vm107_vm5 = vcmp.eq.s32.totalorder %v2962_v19, %v93_v8 }
 0x485   :  { %453 = vrot.lane.b32.xlu0 %v2207_v4, %s2866_s12  ;;  %v2193_v18 = vsel %vm107_vm5, 1.0, %v2864_v1 }
 0x4e7   :  { %v647_v5 = vpop.permute.xlu0 %646 }
 0x4e8   :  { %v649_v6 = vadd.f32 %v647_v5, %v633_v52 }
 0x4ea   :  { %2704 = vtanh.f32 %v649_v6 }
 0x4f4   :  { %v90_v17 = vpop.permute.xlu0 %89 }
 0x4f5   :  { %vm106_vm6 = vcmp.eq.s32.totalorder %v2962_v19, %v90_v17 }
 0x4f6   :  { %v2192_v20 = vsel %vm106_vm6, 1.0, %v2864_v1 }
 0x4f7   :  { %v2705_v21 = vpop.eup %2704  ;;  %2402 = vmatmul.mubr.msk.f32.gmra.mxu0 %vm127_vm1, %v2192_v20 }
 0x4f8   :  { %653 = vrot.lane.b32.xlu1 %v2705_v21, %s2868_s14  ;;  %v96_v22 = vpop.permute.xlu0 %95  ;;  %2404 = vmatprep.mubr.msk.f32.mxu0 %vm127_vm1, %v2193_v18 }
 0x4f9   :  { %vm108_vm7 = vcmp.eq.s32.totalorder %v2962_v19, %v96_v22 }
 0x4fa   :  { %v2194_v25 = vsel %vm108_vm7, 1.0, %v2864_v1 }
 0x4fb   :  { %2405 = vmatmul.mubr.msk.f32.gmra.mxu0 %vm127_vm1, %v2194_v25 }
 0x4fc   :  { %101 = vperm.xlu1 %2693, %v76_v24   ;;  %v99_v28 = vpop.permute.xlu0 %98 }
 0x4fd   :  { %vm109_vm8 = vcmp.eq.s32.totalorder %v2962_v19, %v99_v28 }
 0x4fe   :  { %v2195_v29 = vsel %vm109_vm8, 1.0, %v2864_v1 }
 0x4ff   :  { %2407 = vmatprep.mubr.msk.f32.mxu0 %vm127_vm1, %v2195_v29 }
 0x500   :  { %v3083_v38 = vpop.permute.xlu0 %453 }
 0x501   :  { %v456_v39 = vsel %vm127_vm1, %v2984_v49, %v3083_v38 }
 0x56a   :  { %v654_v32 = vpop.permute.xlu1 %653 }
 0x56b   :  { %v656_v34 = vmul.f32 %v654_v32, %v651_v31 }
 0x56d   :  { %v3077_v35 = vadd.f32 %v657_v33, %v656_v34 }
 0x56f   :  { %660 = vrot.lane.b32.xlu1 %v3077_v35, %s2868_s14 }
 0x577   :  { %v102_v36 = vpop.permute.xlu1 %101 }
 0x578   :  { %vm110_vm9 = vcmp.eq.s32.totalorder %v2962_v19, %v102_v36 }
 0x579   :  { %v2196_v37 = vsel %vm110_vm9, 1.0, %v2864_v1 }
 0x57a   :  { %2408 = vmatmul.mubr.msk.f32.gmra.mxu0 %vm127_vm1, %v2196_v37 }
 0x57b   :  { %2448 = vmatprep.mubr.msk.f32.mxu0 %vm2865_vm0, %v2864_v1 }
 0x57e   :  { %2449 = vmatmul.mubr.msk.f32.vlgmr.msra.gmra.mxu0 %vm457_vm10, %v456_v39 }
 0x57f   :  { %2463 = vmatpush3.msra.mxu0 %v3026_v7  ;;  %2478 = vmatprep.mubr.msk.f32.mxu0 %vm2865_vm0, %v2864_v1 }
 0x580   :  { %2464 = vmatprep.subr.mxu0 %v2864_v1 }
 0x581   :  { %2465 = vmatpush3.msra.mxu0 %v3030_v9 }
 0x582   :  { %2466 = vmatprep.subr.mxu0 %v2864_v1 }
 0x583   :  { %2467 = vmatpush3.msra.mxu0 %v3032_v10 }
 0x584   :  { %2468 = vmatprep.subr.mxu0 %v2864_v1 }
 0x585   :  { %2469 = vmatpush3.msra.mxu0 %v3036_v11 }
 0x586   :  { %2470 = vmatprep.subr.mxu0 %v2864_v1 }
 0x587   :  { %2471 = vmatpush3.msra.mxu0 %v3041_v13 }
 0x588   :  { %2472 = vmatprep.subr.mxu0 %v2864_v1 }
 0x589   :  { %2473 = vmatpush3.msra.mxu0 %v3053_v23 }
 0x58a   :  { %2474 = vmatprep.subr.mxu0 %v2864_v1 }
 0x58b   :  { %2475 = vmatpush3.msra.mxu0 %v3062_v26 }
 0x58c   :  { %2476 = vmatprep.subr.mxu0 %v2864_v1 }
 0x58d   :  { %2477 = vmatpush3.msra.mxu0 %v3065_v27 }
 0x58e   :  { %2511 = vmatprep.subr.mxu0 %v2864_v1 }
 0x5b7   :  { %v3132_v40 = vpop.f32.mrf.mxu0 }
 0x5b9   :  { %v228_v41 = vpop.f32.mrf.mxu0 }
 0x5ba   :  { %v337_v52 = vadd.f32 %v2973_v30, %v228_v41 }
 0x5bb   :  { %v3134_v42 = vpop.f32.mrf.mxu0 }
 0x5bd   :  { %v3136_v43 = vpop.f32.mrf.mxu0 }
 0x5e1   :  { %v3110_v19 = vpop.permute.xlu1 %660 }
 0x5e2   :  { %2490 = vmatmul.mubr.msk.f32.vlgmr.msra.gmra.mxu1 %vm127_vm1, %v3110_v19 }
 0x5e3   :  { %2493 = vmatpush3.msra.mxu1 %v3026_v7  ;;  %2508 = vmatprep.mubr.msk.f32.mxu1 %vm2865_vm0, %v2864_v1 }
 0x5e4   :  { %2494 = vmatprep.subr.mxu1 %v2864_v1 }
 0x5e5   :  { %2495 = vmatpush3.msra.mxu1 %v3030_v9 }
 0x5e6   :  { %2496 = vmatprep.subr.mxu1 %v2864_v1 }
 0x5e7   :  { %2497 = vmatpush3.msra.mxu1 %v3032_v10 }
 0x5e8   :  { %2498 = vmatprep.subr.mxu1 %v2864_v1 }
 0x5e9   :  { %2499 = vmatpush3.msra.mxu1 %v3036_v11 }
 0x5ea   :  { %2500 = vmatprep.subr.mxu1 %v2864_v1 }
 0x5eb   :  { %2501 = vmatpush3.msra.mxu1 %v3041_v13 }
 0x5ec   :  { %2502 = vmatprep.subr.mxu1 %v2864_v1 }
 0x5ed   :  { %2503 = vmatpush3.msra.mxu1 %v3053_v23 }
 0x5ee   :  { %2504 = vmatprep.subr.mxu1 %v2864_v1 }
 0x5ef   :  { %2505 = vmatpush3.msra.mxu1 %v3062_v26 }
 0x5f0   :  { %2506 = vmatprep.subr.mxu1 %v2864_v1 }
 0x5f1   :  { %2507 = vmatpush3.msra.mxu1 %v3065_v27 }
 0x5f2   :  { %2541 = vmatprep.subr.mxu1 %v2864_v1 }
 0x63a   :  { %v3138_v44 = vpop.f32.mrf.mxu0 }
 0x63c   :  { %v3140_v45 = vpop.f32.mrf.mxu0 }
 0x63e   :  { %v527_v47 = vpop.f32.mrf.mxu0 }
 0x63f   :  { %v528_v48 = vadd.f32 %v3145_v46, %v527_v47 }
 0x640   :  { %v2450_v49 = vpop.f32.mrf.mxu0 }
 0x641   :  { %538 = vrot.lane.b32.xlu0 %v528_v48, %s2866_s12  ;;  %v2211_v50 = vmul.f32 -1.442695, %v528_v48  ;;  %v338_v49 = vadd.f32 %v3132_v40, %v2973_v30 }
 0x643   :  { %2706 = vpow2.f32 %v2211_v50 }
 0x650   :  { %v2707_v51 = vpop.eup %2706 }
 0x651   :  { %v534_v53 = vadd.f32 1.0, %v2707_v51 }
 0x653   :  { %2708 = vrcp.f32 %v534_v53 }
 0x660   :  { %v2709_v57 = vpop.eup %2708 }
 0x661   :  { %v548_v18 = vsub.f32 1.0, %v2709_v57  ;;  %v554_v21 = vmul.f32 %v2709_v57, %v3083_v38 }
 0x6a2   :  { %v835_v54 = vpop.f32.mrf.mxu1 }
 0x6a3   :  { %v839_v55 = vadd.f32 %v835_v54, %v337_v52 }
 0x6a4   :  { %v2491_v56 = vpop.f32.mrf.mxu1 }
 0x6a5   :  { %847 = vrot.lane.b32.xlu1 %v839_v55, %s2866_s12  ;;  %v2217_v60 = vmul.f32 -1.442695, %v839_v55 }
 0x6a7   :  { %2710 = vpow2.f32 %v2217_v60 }
 0x6b3   :  { %v539_v58 = vpop.permute.xlu0 %538 }
 0x6b4   :  { %v541_v59 = vmul.f32 %v2709_v57, %v539_v58  ;;  %v2711_v61 = vpop.eup %2710 }
 0x6b5   :  { %v843_v62 = vadd.f32 1.0, %v2711_v61 }
 0x6b6   :  { %543 = vrot.lane.b32.xlu0 %v541_v59, %s2867_s13 }
 0x6b7   :  { %2712 = vrcp.f32 %v843_v62 }
 0x6c4   :  { %v2713_v63 = vpop.eup %2712 }
 0x6c5   :  { %v857_v28 = vsub.f32 1.0, %v2713_v63  ;;  %v863_v31 = vmul.f32 %v2713_v63, %v3077_v35 }
 0x717   :  { %v848_v0 = vpop.permute.xlu1 %847 }
 0x718   :  { %v850_v2 = vmul.f32 %v2713_v63, %v848_v0 }
 0x71a   :  { %852 = vrot.lane.b32.xlu1 %v850_v2, %s2867_s13 }
 0x728   :  { %v544_v3 = vpop.permute.xlu0 %543 }
 0x729   :  { %v546_v4 = vadd.f32 %v544_v3, %v528_v48 }
 0x72b   :  { %2714 = vtanh.f32 %v546_v4 }
 0x738   :  { %v2715_v5 = vpop.eup %2714 }
 0x739   :  { %550 = vrot.lane.b32.xlu0 %v2715_v5, %s2868_s14 }
 0x78c   :  { %v853_v6 = vpop.permute.xlu1 %852 }
 0x78d   :  { %v855_v8 = vadd.f32 %v853_v6, %v839_v55 }
 0x78f   :  { %2716 = vtanh.f32 %v855_v8 }
 0x79c   :  { %v2717_v17 = vpop.eup %2716 }
 0x79d   :  { %859 = vrot.lane.b32.xlu1 %v2717_v17, %s2868_s14 }
 0x7ab   :  { %v551_v20 = vpop.permute.xlu0 %550 }
 0x7ac   :  { %v553_v22 = vmul.f32 %v551_v20, %v548_v18 }
 0x7ae   :  { %v3156_v24 = vadd.f32 %v554_v21, %v553_v22 }
 0x7b0   :  { %v663_v25 = vsel %vm127_vm1, %v3110_v19, %v3156_v24 }
 0x7b1   :  { %2479 = vmatmul.mubr.msk.f32.vlgmr.msra.gmra.mxu0 %vm457_vm10, %v663_v25 }
 0x7b2   :  { %2512 = vmatpush3.msra.mxu0 %v2927_v12  ;;  %2519 = vmatprep.mubr.msk.f32.mxu0 %vm2865_vm0, %v2864_v1 }
 0x7b3   :  { %2513 = vmatprep.subr.mxu0 %v2864_v1 }
 0x7b4   :  { %2514 = vmatpush3.msra.mxu0 %v2931_v14 }
 0x7b5   :  { %2515 = vmatprep.subr.mxu0 %v2864_v1 }
 0x7b6   :  { %2516 = vmatpush3.msra.mxu0 %v2935_v15 }
 0x7b7   :  { %2517 = vmatprep.subr.mxu0 %v2864_v1 }
 0x7b8   :  { %2518 = vmatpush3.msra.mxu0 %v2939_v16 }
 0x7b9   :  { %2522 = vmatprep.subr.mxu0 %v2864_v1 }
 0x80f   :  { %v860_v29 = vpop.permute.xlu1 %859 }
 0x810   :  { %v862_v32 = vmul.f32 %v860_v29, %v857_v28 }
 0x812   :  { %v3173_v33 = vadd.f32 %v863_v31, %v862_v32 }
 0x814   :  { %866 = vrot.lane.b32.xlu0 %v3173_v33, %s2868_s14 }
 0x871   :  { %v733_v34 = vpop.f32.mrf.mxu0 }
 0x872   :  { %v734_v36 = vadd.f32 %v3145_v46, %v733_v34 }
 0x873   :  { %v2480_v37 = vpop.f32.mrf.mxu0 }
 0x874   :  { %744 = vrot.lane.b32.xlu1 %v734_v36, %s2866_s12  ;;  %v2215_v35 = vmul.f32 -1.442695, %v734_v36 }
 0x876   :  { %2718 = vpow2.f32 %v2215_v35 }
 0x883   :  { %v2719_v39 = vpop.eup %2718 }
 0x884   :  { %v740_v19 = vadd.f32 1.0, %v2719_v39 }
 0x886   :  { %v867_v38 = vpop.permute.xlu0 %866  ;;  %2720 = vrcp.f32 %v740_v19  ;;  %v339_v19 = vadd.f32 %v2973_v30, %v3136_v43 }
 0x887   :  { %2520 = vmatmul.mubr.msk.f32.vlgmr.msra.gmra.mxu0 %vm127_vm1, %v867_v38 }
 0x888   :  { %2523 = vmatpush3.msra.mxu0 %v3026_v7  ;;  %2538 = vmatprep.mubr.msk.f32.mxu0 %vm2865_vm0, %v2864_v1 }
 0x889   :  { %2524 = vmatprep.subr.mxu0 %v2864_v1 }
 0x88a   :  { %2525 = vmatpush3.msra.mxu0 %v3030_v9 }
 0x88b   :  { %2526 = vmatprep.subr.mxu0 %v2864_v1 }
 0x88c   :  { %2527 = vmatpush3.msra.mxu0 %v3032_v10 }
 0x88d   :  { %2528 = vmatprep.subr.mxu0 %v2864_v1 }
 0x88e   :  { %2529 = vmatpush3.msra.mxu0 %v3036_v11 }
 0x88f   :  { %2530 = vmatprep.subr.mxu0 %v2864_v1 }
 0x890   :  { %2531 = vmatpush3.msra.mxu0 %v3041_v13 }
 0x891   :  { %2532 = vmatprep.subr.mxu0 %v2864_v1 }
 0x892   :  { %2533 = vmatpush3.msra.mxu0 %v3053_v23 }
 0x893   :  { %2534 = vmatprep.subr.mxu0 %v2864_v1  ;;  %v2721_v41 = vpop.eup %2720 }
 0x894   :  { %2535 = vmatpush3.msra.mxu0 %v3062_v26  ;;  %v754_v40 = vsub.f32 1.0, %v2721_v41  ;;  %v760_v63 = vmul.f32 %v2721_v41, %v3156_v24 }
 0x895   :  { %2536 = vmatprep.subr.mxu0 %v2864_v1 }
 0x896   :  { %2537 = vmatpush3.msra.mxu0 %v3065_v27 }
 0x897   :  { %2571 = vmatprep.subr.mxu0 %v2864_v1 }
 0x8e6   :  { %v745_v47 = vpop.permute.xlu1 %744 }
 0x8e7   :  { %v747_v48 = vmul.f32 %v2721_v41, %v745_v47 }
 0x8e9   :  { %749 = vrot.lane.b32.xlu0 %v747_v48, %s2867_s13 }
 0x947   :  { %v1041_v50 = vpop.f32.mrf.mxu0 }
 0x948   :  { %v1045_v51 = vadd.f32 %v1041_v50, %v338_v49 }
 0x949   :  { %v2521_v52 = vpop.f32.mrf.mxu0 }
 0x94a   :  { %1053 = vrot.lane.b32.xlu1 %v1045_v51, %s2866_s12  ;;  %v2221_v56 = vmul.f32 -1.442695, %v1045_v51 }
 0x95b   :  { %v750_v53 = vpop.permute.xlu0 %749 }
 0x95c   :  { %v752_v54 = vadd.f32 %v750_v53, %v734_v36 }
 0x95e   :  { %2722 = vtanh.f32 %v752_v54 }
 0x95f   :  { %2724 = vpow2.f32 %v2221_v56 }
 0x96b   :  { %v2723_v55 = vpop.eup %2722 }
 0x96c   :  { %756 = vrot.lane.b32.xlu0 %v2723_v55, %s2868_s14  ;;  %v2725_v57 = vpop.eup %2724 }
 0x96d   :  { %v1049_v58 = vadd.f32 1.0, %v2725_v57 }
 0x96f   :  { %2726 = vrcp.f32 %v1049_v58 }
 0x97c   :  { %v2727_v59 = vpop.eup %2726 }
 0x97d   :  { %v1063_v20 = vsub.f32 1.0, %v2727_v59  ;;  %v1069_v22 = vmul.f32 %v2727_v59, %v3173_v33 }
 0x9bc   :  { %v1054_v60 = vpop.permute.xlu1 %1053 }
 0x9bd   :  { %v1056_v61 = vmul.f32 %v2727_v59, %v1054_v60 }
 0x9bf   :  { %1058 = vrot.lane.b32.xlu1 %v1056_v61, %s2867_s13 }
 0x9de   :  { %v757_v62 = vpop.permute.xlu0 %756 }
 0x9df   :  { %v759_v0 = vmul.f32 %v757_v62, %v754_v40 }
 0x9e1   :  { %v3205_v2 = vadd.f32 %v760_v63, %v759_v0 }
 0x9e3   :  { %v869_v3 = vsel %vm127_vm1, %v867_v38, %v3205_v2 }
 0x9e4   :  { %2509 = vmatmul.mubr.msk.f32.vlgmr.msra.gmra.mxu1 %vm457_vm10, %v869_v3 }
 0x9e5   :  { %2542 = vmatpush3.msra.mxu1 %v2927_v12  ;;  %2549 = vmatprep.mubr.msk.f32.mxu1 %vm2865_vm0, %v2864_v1 }
 0x9e6   :  { %2543 = vmatprep.subr.mxu1 %v2864_v1 }
 0x9e7   :  { %2544 = vmatpush3.msra.mxu1 %v2931_v14 }
 0x9e8   :  { %2545 = vmatprep.subr.mxu1 %v2864_v1 }
 0x9e9   :  { %2546 = vmatpush3.msra.mxu1 %v2935_v15 }
 0x9ea   :  { %2547 = vmatprep.subr.mxu1 %v2864_v1 }
 0x9eb   :  { %2548 = vmatpush3.msra.mxu1 %v2939_v16 }
 0x9ec   :  { %2552 = vmatprep.subr.mxu1 %v2864_v1 }
 0xa31   :  { %v1059_v4 = vpop.permute.xlu1 %1058 }
 0xa32   :  { %v1061_v5 = vadd.f32 %v1059_v4, %v1045_v51 }
 0xa34   :  { %2728 = vtanh.f32 %v1061_v5 }
 0xa41   :  { %v2729_v6 = vpop.eup %2728 }
 0xa42   :  { %1065 = vrot.lane.b32.xlu0 %v2729_v6, %s2868_s14 }
 0xaa4   :  { %v939_v8 = vpop.f32.mrf.mxu1 }
 0xaa5   :  { %v940_v17 = vadd.f32 %v3145_v46, %v939_v8 }
 0xaa6   :  { %v2510_v18 = vpop.f32.mrf.mxu1 }
 0xaa7   :  { %950 = vrot.lane.b32.xlu0 %v940_v17, %s2866_s12  ;;  %v2219_v29 = vmul.f32 -1.442695, %v940_v17 }
 0xaa9   :  { %2730 = vpow2.f32 %v2219_v29 }
 0xab4   :  { %v1066_v21 = vpop.permute.xlu0 %1065 }
 0xab5   :  { %v1068_v25 = vmul.f32 %v1066_v21, %v1063_v20 }
 0xab6   :  { %v2731_v31 = vpop.eup %2730 }
 0xab7   :  { %v3224_v28 = vadd.f32 %v1069_v22, %v1068_v25  ;;  %v946_v32 = vadd.f32 1.0, %v2731_v31 }
 0xab9   :  { %1072 = vrot.lane.b32.xlu1 %v3224_v28, %s2868_s14  ;;  %2732 = vrcp.f32 %v946_v32 }
 0xac6   :  { %v2733_v34 = vpop.eup %2732 }
 0xac7   :  { %v960_v49 = vsub.f32 1.0, %v2733_v34  ;;  %v966_v51 = vmul.f32 %v2733_v34, %v3205_v2 }
 0xb19   :  { %v951_v36 = vpop.permute.xlu0 %950 }
 0xb1a   :  { %v953_v37 = vmul.f32 %v2733_v34, %v951_v36 }
 0xb1c   :  { %955 = vrot.lane.b32.xlu1 %v953_v37, %s2867_s13 }
 0xb2b   :  { %v1073_v38 = vpop.permute.xlu1 %1072 }
 0xb2c   :  { %2550 = vmatmul.mubr.msk.f32.vlgmr.msra.gmra.mxu1 %vm127_vm1, %v1073_v38 }
 0xb2d   :  { %2553 = vmatpush3.msra.mxu1 %v3026_v7  ;;  %2568 = vmatprep.mubr.msk.f32.mxu1 %vm2865_vm0, %v2864_v1 }
 0xb2e   :  { %2554 = vmatprep.subr.mxu1 %v2864_v1 }
 0xb2f   :  { %2555 = vmatpush3.msra.mxu1 %v3030_v9 }
 0xb30   :  { %2556 = vmatprep.subr.mxu1 %v2864_v1 }
 0xb31   :  { %2557 = vmatpush3.msra.mxu1 %v3032_v10 }
 0xb32   :  { %2558 = vmatprep.subr.mxu1 %v2864_v1 }
 0xb33   :  { %2559 = vmatpush3.msra.mxu1 %v3036_v11 }
 0xb34   :  { %2560 = vmatprep.subr.mxu1 %v2864_v1 }
 0xb35   :  { %2561 = vmatpush3.msra.mxu1 %v3041_v13 }
 0xb36   :  { %2562 = vmatprep.subr.mxu1 %v2864_v1 }
 0xb37   :  { %2563 = vmatpush3.msra.mxu1 %v3053_v23 }
 0xb38   :  { %2564 = vmatprep.subr.mxu1 %v2864_v1 }
 0xb39   :  { %2565 = vmatpush3.msra.mxu1 %v3062_v26 }
 0xb3a   :  { %2566 = vmatprep.subr.mxu1 %v2864_v1 }
 0xb3b   :  { %2567 = vmatpush3.msra.mxu1 %v3065_v27 }
 0xb3c   :  { %2601 = vmatprep.subr.mxu1 %v2864_v1 }
 0xb8e   :  { %v956_v33 = vpop.permute.xlu1 %955 }
 0xb8f   :  { %v958_v35 = vadd.f32 %v956_v33, %v940_v17 }
 0xb91   :  { %2734 = vtanh.f32 %v958_v35 }
 0xb9e   :  { %v2735_v39 = vpop.eup %2734 }
 0xb9f   :  { %962 = vrot.lane.b32.xlu0 %v2735_v39, %s2868_s14 }
 0xbec   :  { %v1247_v41 = vpop.f32.mrf.mxu1 }
 0xbed   :  { %v1251_v47 = vadd.f32 %v1247_v41, %v339_v19 }
 0xbee   :  { %v2551_v48 = vpop.f32.mrf.mxu1 }
 0xbef   :  { %1259 = vrot.lane.b32.xlu1 %v1251_v47, %s2866_s12  ;;  %v2225_v43 = vmul.f32 -1.442695, %v1251_v47 }
 0xbf1   :  { %2736 = vpow2.f32 %v2225_v43 }
 0xbfe   :  { %v2737_v55 = vpop.eup %2736 }
 0xbff   :  { %v1255_v56 = vadd.f32 1.0, %v2737_v55 }
 0xc01   :  { %2738 = vrcp.f32 %v1255_v56 }
 0xc0e   :  { %v2739_v57 = vpop.eup %2738 }
 0xc0f   :  { %v1269_v6 = vsub.f32 1.0, %v2739_v57  ;;  %v1275_v17 = vmul.f32 %v2739_v57, %v3224_v28 }
 0xc11   :  { %v963_v50 = vpop.permute.xlu0 %962 }
 0xc12   :  { %v965_v52 = vmul.f32 %v963_v50, %v960_v49 }
 0xc14   :  { %v3253_v53 = vadd.f32 %v966_v51, %v965_v52 }
 0xc16   :  { %v1075_v54 = vsel %vm127_vm1, %v1073_v38, %v3253_v53 }
 0xc17   :  { %2539 = vmatmul.mubr.msk.f32.vlgmr.msra.gmra.mxu0 %vm457_vm10, %v1075_v54 }
 0xc18   :  { %2572 = vmatpush3.msra.mxu0 %v2927_v12  ;;  %2579 = vmatprep.mubr.msk.f32.mxu0 %vm2865_vm0, %v2864_v1 }
 0xc19   :  { %2573 = vmatprep.subr.mxu0 %v2864_v1 }
 0xc1a   :  { %2574 = vmatpush3.msra.mxu0 %v2931_v14 }
 0xc1b   :  { %2575 = vmatprep.subr.mxu0 %v2864_v1 }
 0xc1c   :  { %2576 = vmatpush3.msra.mxu0 %v2935_v15 }
 0xc1d   :  { %2577 = vmatprep.subr.mxu0 %v2864_v1 }
 0xc1e   :  { %2578 = vmatpush3.msra.mxu0 %v2939_v16 }
 0xc1f   :  { %2582 = vmatprep.subr.mxu0 %v2864_v1 }
 0xc61   :  { %v1260_v58 = vpop.permute.xlu1 %1259 }
 0xc62   :  { %v1262_v59 = vmul.f32 %v2739_v57, %v1260_v58 }
 0xc64   :  { %1264 = vrot.lane.b32.xlu0 %v1262_v59, %s2867_s13 }
 0xcd6   :  { %v1265_v60 = vpop.permute.xlu0 %1264 }
 0xcd7   :  { %v1267_v61 = vadd.f32 %v1265_v60, %v1251_v47  ;;  %v1145_v40 = vpop.f32.mrf.mxu0 }
 0xcd8   :  { %v1146_v0 = vadd.f32 %v3145_v46, %v1145_v40 }
 0xcd9   :  { %2740 = vtanh.f32 %v1267_v61  ;;  %v2540_v62 = vpop.f32.mrf.mxu0 }
 0xcda   :  { %v2223_v3 = vmul.f32 -1.442695, %v1146_v0 }
 0xcdc   :  { %2742 = vpow2.f32 %v2223_v3 }
 0xce6   :  { %v2741_v63 = vpop.eup %2740 }
 0xce7   :  { %1271 = vrot.lane.b32.xlu1 %v2741_v63, %s2868_s14 }
 0xce9   :  { %v2743_v4 = vpop.eup %2742 }
 0xcea   :  { %v1152_v5 = vadd.f32 1.0, %v2743_v4 }
 0xceb   :  { %1156 = vrot.lane.b32.xlu1 %v1146_v0, %s2866_s12 }
 0xcec   :  { %2744 = vrcp.f32 %v1152_v5 }
 0xcf9   :  { %v2745_v22 = vpop.eup %2744 }
 0xcfa   :  { %v1166_v34 = vsub.f32 1.0, %v2745_v22  ;;  %v1172_v37 = vmul.f32 %v2745_v22, %v3253_v53 }
 0xd59   :  { %v1272_v8 = vpop.permute.xlu1 %1271 }
 0xd5a   :  { %v1274_v18 = vmul.f32 %v1272_v8, %v1269_v6 }
 0xd5c   :  { %v3273_v20 = vadd.f32 %v1275_v17, %v1274_v18 }
 0xd5d   :  { %v1157_v21 = vpop.permute.xlu1 %1156 }
 0xd5e   :  { %1278 = vrot.lane.b32.xlu0 %v3273_v20, %s2868_s14  ;;  %v1159_v25 = vmul.f32 %v2745_v22, %v1157_v21 }
 0xd62   :  { %1161 = vrot.lane.b32.xlu0 %v1159_v25, %s2867_s13  ;;  %v2790_v25 = vld [vmem:[#allocation3 + $0x58] sm:$0xff] }
 0xdd0   :  { %v1279_v29 = vpop.permute.xlu0 %1278 }
 0xdd1   :  { %2580 = vmatmul.mubr.msk.f32.vlgmr.msra.gmra.mxu0 %vm127_vm1, %v1279_v29 }
 0xdd2   :  { %2583 = vmatpush3.msra.mxu0 %v3026_v7  ;;  %2598 = vmatprep.mubr.msk.f32.mxu0 %vm2865_vm0, %v2864_v1 }
 0xdd3   :  { %2584 = vmatprep.subr.mxu0 %v2864_v1 }
 0xdd4   :  { %v1162_v28 = vpop.permute.xlu0 %1161  ;;  %2585 = vmatpush3.msra.mxu0 %v3030_v9 }
 0xdd5   :  { %v1164_v31 = vadd.f32 %v1162_v28, %v1146_v0  ;;  %2586 = vmatprep.subr.mxu0 %v2864_v1  ;;  %v2792_v28 = vld [vmem:[#allocation3 + $0x48] sm:$0xff] }
 0xdd6   :  { %2587 = vmatpush3.msra.mxu0 %v3032_v10 }
 0xdd7   :  { %2746 = vtanh.f32 %v1164_v31  ;;  %2588 = vmatprep.subr.mxu0 %v2864_v1  ;;  %v2793_v31 = vld [vmem:[#allocation3 + $0x40] sm:$0xff] }
 0xdd8   :  { %2589 = vmatpush3.msra.mxu0 %v3036_v11 }
 0xdd9   :  { %2590 = vmatprep.subr.mxu0 %v2864_v1 }
 0xdda   :  { %2591 = vmatpush3.msra.mxu0 %v3041_v13 }
 0xddb   :  { %2592 = vmatprep.subr.mxu0 %v2864_v1 }
 0xddc   :  { %2593 = vmatpush3.msra.mxu0 %v3053_v23 }
 0xddd   :  { %2594 = vmatprep.subr.mxu0 %v2864_v1 }
 0xdde   :  { %2595 = vmatpush3.msra.mxu0 %v3062_v26 }
 0xddf   :  { %2596 = vmatprep.subr.mxu0 %v2864_v1 }
 0xde0   :  { %2597 = vmatpush3.msra.mxu0 %v3065_v27 }
 0xde1   :  { %2631 = vmatprep.subr.mxu0 %v2864_v1 }
 0xde4   :  { %v2747_v32 = vpop.eup %2746 }
 0xde5   :  { %1168 = vrot.lane.b32.xlu1 %v2747_v32, %s2868_s14  ;;  %v341_v32 = vadd.f32 %v2973_v30, %v3140_v45 }
 0xe57   :  { %v1169_v36 = vpop.permute.xlu1 %1168 }
 0xe58   :  { %v1171_v38 = vmul.f32 %v1169_v36, %v1166_v34 }
 0xe5a   :  { %v3299_v33 = vadd.f32 %v1172_v37, %v1171_v38 }
 0xe5c   :  { %v1281_v35 = vsel %vm127_vm1, %v1279_v29, %v3299_v33  ;;  %v2791_v29 = vld [vmem:[#allocation3 + $0x50] sm:$0xff] }
 0xe5d   :  { %2569 = vmatmul.mubr.msk.f32.vlgmr.msra.gmra.mxu1 %vm457_vm10, %v1281_v35 }
 0xe5e   :  { %2602 = vmatpush3.msra.mxu1 %v2927_v12  ;;  %2609 = vmatprep.mubr.msk.f32.mxu1 %vm2865_vm0, %v2864_v1  ;;  %v340_v12 = vadd.f32 %v3134_v42, %v2973_v30 }
 0xe5f   :  { %2603 = vmatprep.subr.mxu1 %v2864_v1 }
 0xe60   :  { %2604 = vmatpush3.msra.mxu1 %v2931_v14 }
 0xe61   :  { %2605 = vmatprep.subr.mxu1 %v2864_v1 }
 0xe62   :  { %2606 = vmatpush3.msra.mxu1 %v2935_v15 }
 0xe63   :  { %2607 = vmatprep.subr.mxu1 %v2864_v1 }
 0xe64   :  { %2608 = vmatpush3.msra.mxu1 %v2939_v16 }
 0xe65   :  { %2612 = vmatprep.subr.mxu1 %v2864_v1 }
 0xe91   :  { %v1453_v39 = vpop.f32.mrf.mxu0 }
 0xe92   :  { %v1457_v19 = vadd.f32 %v1453_v39, %v340_v12 }
 0xe93   :  { %v2581_v41 = vpop.f32.mrf.mxu0 }
 0xe94   :  { %1465 = vrot.lane.b32.xlu0 %v1457_v19, %s2866_s12  ;;  %v2229_v47 = vmul.f32 -1.442695, %v1457_v19 }
 0xe96   :  { %2748 = vpow2.f32 %v2229_v47 }
 0xea3   :  { %v2749_v14 = vpop.eup %2748 }
 0xea4   :  { %v1461_v48 = vadd.f32 1.0, %v2749_v14 }
 0xea6   :  { %2750 = vrcp.f32 %v1461_v48 }
 0xeb3   :  { %v2751_v15 = vpop.eup %2750 }
 0xeb4   :  { %v1475_v61 = vsub.f32 1.0, %v2751_v15  ;;  %v1481_v62 = vmul.f32 %v2751_v15, %v3273_v20 }
 0xf06   :  { %v1466_v49 = vpop.permute.xlu0 %1465 }
 0xf07   :  { %v1468_v50 = vmul.f32 %v2751_v15, %v1466_v49 }
 0xf09   :  { %1470 = vrot.lane.b32.xlu1 %v1468_v50, %s2867_s13 }
 0xf1d   :  { %v1351_v16 = vpop.f32.mrf.mxu1 }
 0xf1e   :  { %v1352_v51 = vadd.f32 %v3145_v46, %v1351_v16 }
 0xf1f   :  { %v2570_v52 = vpop.f32.mrf.mxu1 }
 0xf20   :  { %1362 = vrot.lane.b32.xlu1 %v1352_v51, %s2866_s12  ;;  %v2227_v42 = vmul.f32 -1.442695, %v1352_v51 }
 0xf22   :  { %2752 = vpow2.f32 %v2227_v42 }
 0xf2f   :  { %v2753_v55 = vpop.eup %2752 }
 0xf30   :  { %v1358_v56 = vadd.f32 1.0, %v2753_v55 }
 0xf7b   :  { %v1471_v54 = vpop.permute.xlu1 %1470 }
 0xf7c   :  { %v1473_v43 = vadd.f32 %v1471_v54, %v1457_v19 }
 0xf7e   :  { %2754 = vtanh.f32 %v1473_v43 }
 0xf7f   :  { %2756 = vrcp.f32 %v1358_v56 }
 0xf8b   :  { %v2755_v57 = vpop.eup %2754 }
 0xf8c   :  { %1477 = vrot.lane.b32.xlu0 %v2755_v57, %s2868_s14  ;;  %v2757_v58 = vpop.eup %2756 }
 0xf8d   :  { %v1372_v8 = vsub.f32 1.0, %v2757_v58  ;;  %v1378_v18 = vmul.f32 %v2757_v58, %v3299_v33 }
 0xf92   :  { %v1363_v59 = vpop.permute.xlu1 %1362 }
 0xf93   :  { %v1365_v60 = vmul.f32 %v2757_v58, %v1363_v59 }
 0xf95   :  { %1367 = vrot.lane.b32.xlu1 %v1365_v60, %s2867_s13 }
 0xffe   :  { %v1478_v40 = vpop.permute.xlu0 %1477 }
 0xfff   :  { %v1480_v63 = vmul.f32 %v1478_v40, %v1475_v61 }
0x1001   :  { %v3323_v0 = vadd.f32 %v1481_v62, %v1480_v63 }
0x1003   :  { %1484 = vrot.lane.b32.xlu0 %v3323_v0, %s2868_s14 }
0x1007   :  { %v1368_v3 = vpop.permute.xlu1 %1367 }
0x1008   :  { %v1370_v4 = vadd.f32 %v1368_v3, %v1352_v51 }
0x100a   :  { %2758 = vtanh.f32 %v1370_v4 }
0x1017   :  { %v2759_v5 = vpop.eup %2758 }
0x1018   :  { %1374 = vrot.lane.b32.xlu0 %v2759_v5, %s2868_s14 }
0x1075   :  { %v1485_v6 = vpop.permute.xlu0 %1484 }
0x1076   :  { %2610 = vmatmul.mubr.msk.f32.vlgmr.msra.gmra.mxu1 %vm127_vm1, %v1485_v6 }
0x1077   :  { %2613 = vmatpush3.msra.mxu1 %v3026_v7  ;;  %2628 = vmatprep.mubr.msk.f32.mxu1 %vm2865_vm0, %v2864_v1 }
0x1078   :  { %2614 = vmatprep.subr.mxu1 %v2864_v1 }
0x1079   :  { %2615 = vmatpush3.msra.mxu1 %v3030_v9 }
0x107a   :  { %2616 = vmatprep.subr.mxu1 %v2864_v1 }
0x107b   :  { %2617 = vmatpush3.msra.mxu1 %v3032_v10 }
0x107c   :  { %2618 = vmatprep.subr.mxu1 %v2864_v1 }
0x107d   :  { %2619 = vmatpush3.msra.mxu1 %v3036_v11 }
0x107e   :  { %2620 = vmatprep.subr.mxu1 %v2864_v1 }
0x107f   :  { %2621 = vmatpush3.msra.mxu1 %v3041_v13 }
0x1080   :  { %2622 = vmatprep.subr.mxu1 %v2864_v1 }
0x1081   :  { %2623 = vmatpush3.msra.mxu1 %v3053_v23 }
0x1082   :  { %2624 = vmatprep.subr.mxu1 %v2864_v1 }
0x1083   :  { %2625 = vmatpush3.msra.mxu1 %v3062_v26 }
0x1084   :  { %2626 = vmatprep.subr.mxu1 %v2864_v1 }
0x1085   :  { %2627 = vmatpush3.msra.mxu1 %v3065_v27 }
0x108a   :  { %v1375_v17 = vpop.permute.xlu0 %1374 }
0x108b   :  { %v1377_v20 = vmul.f32 %v1375_v17, %v1372_v8 }
0x108d   :  { %v3347_v21 = vadd.f32 %v1378_v18, %v1377_v20 }
0x108f   :  { %v1487_v22 = vsel %vm127_vm1, %v1485_v6, %v3347_v21 }
0x1090   :  { %2599 = vmatmul.mubr.msk.f32.vlgmr.msra.gmra.mxu0 %vm457_vm10, %v1487_v22 }
0x1091   :  { %2632 = vmatpush3.msra.mxu0 %v2790_v25  ;;  %2639 = vmatprep.mubr.msk.f32.mxu0 %vm2865_vm0, %v2864_v1 }
0x1092   :  { %2633 = vmatprep.subr.mxu0 %v2864_v1 }
0x1093   :  { %2634 = vmatpush3.msra.mxu0 %v2791_v29 }
0x1094   :  { %2635 = vmatprep.subr.mxu0 %v2864_v1 }
0x1095   :  { %2636 = vmatpush3.msra.mxu0 %v2792_v28 }
0x1096   :  { %2637 = vmatprep.subr.mxu0 %v2864_v1 }
0x1097   :  { %2638 = vmatpush3.msra.mxu0 %v2793_v31 }
0x1098   :  { %2642 = vmatprep.subr.mxu0 %v2864_v1 }
0x1136   :  { %v1659_v34 = vpop.f32.mrf.mxu1 }
0x1137   :  { %v1663_v36 = vadd.f32 %v1659_v34, %v341_v32 }
0x1138   :  { %v2611_v37 = vpop.f32.mrf.mxu1 }
0x1139   :  { %1671 = vrot.lane.b32.xlu1 %v1663_v36, %s2866_s12  ;;  %v2233_v39 = vmul.f32 -1.442695, %v1663_v36 }
0x113b   :  { %2760 = vpow2.f32 %v2233_v39 }
0x1148   :  { %v2761_v19 = vpop.eup %2760 }
0x1149   :  { %v1667_v41 = vadd.f32 1.0, %v2761_v19 }
0x114b   :  { %2762 = vrcp.f32 %v1667_v41 }
0x1150   :  { %v1557_v38 = vpop.f32.mrf.mxu0 }
0x1151   :  { %v1558_v35 = vadd.f32 %v3145_v46, %v1557_v38 }
0x1152   :  { %v2600_v12 = vpop.f32.mrf.mxu0 }
0x1153   :  { %1568 = vrot.lane.b32.xlu1 %v1558_v35, %s2866_s12  ;;  %v2231_v47 = vmul.f32 -1.442695, %v1558_v35 }
0x1155   :  { %2764 = vpow2.f32 %v2231_v47 }
0x1158   :  { %v2763_v14 = vpop.eup %2762 }
0x1159   :  { %v1681_v57 = vsub.f32 1.0, %v2763_v14  ;;  %v1687_v59 = vmul.f32 %v2763_v14, %v3323_v0 }
0x1162   :  { %v2765_v15 = vpop.eup %2764 }
0x1163   :  { %v1564_v49 = vadd.f32 1.0, %v2765_v15 }
0x1165   :  { %2766 = vrcp.f32 %v1564_v49 }
0x1172   :  { %v2767_v50 = vpop.eup %2766 }
0x1173   :  { %v1578_v62 = vsub.f32 1.0, %v2767_v50  ;;  %v1584_v3 = vmul.f32 %v2767_v50, %v3347_v21 }
0x11ab   :  { %v1672_v45 = vpop.permute.xlu1 %1671 }
0x11ac   :  { %v1674_v48 = vmul.f32 %v2763_v14, %v1672_v45 }
0x11ae   :  { %1676 = vrot.lane.b32.xlu0 %v1674_v48, %s2867_s13 }
0x11c5   :  { %v1569_v16 = vpop.permute.xlu1 %1568 }
0x11c6   :  { %v1571_v51 = vmul.f32 %v2767_v50, %v1569_v16 }
0x11c8   :  { %1573 = vrot.lane.b32.xlu1 %v1571_v51, %s2867_s13 }
0x1220   :  { %v1677_v52 = vpop.permute.xlu0 %1676 }
0x1221   :  { %v1679_v42 = vadd.f32 %v1677_v52, %v1663_v36 }
0x1223   :  { %2768 = vtanh.f32 %v1679_v42 }
0x1230   :  { %v2769_v54 = vpop.eup %2768 }
0x1231   :  { %1683 = vrot.lane.b32.xlu0 %v2769_v54, %s2868_s14 }
0x123a   :  { %v1574_v43 = vpop.permute.xlu1 %1573 }
0x123b   :  { %v1576_v55 = vadd.f32 %v1574_v43, %v1558_v35 }
0x123d   :  { %2770 = vtanh.f32 %v1576_v55 }
0x124a   :  { %v2771_v56 = vpop.eup %2770 }
0x124b   :  { %1580 = vrot.lane.b32.xlu1 %v2771_v56, %s2868_s14 }
0x12a3   :  { %v1684_v58 = vpop.permute.xlu0 %1683 }
0x12a4   :  { %v1686_v60 = vmul.f32 %v1684_v58, %v1681_v57 }
0x12a6   :  { %v3368_v61 = vadd.f32 %v1687_v59, %v1686_v60  ;;  %v61_v59 = vld [vmem:[#allocation3 + $0xb8] sm:$0xff] }
0x12a7   :  { %2661 = vmatprep.subr.mxu1 %v61_v59 }
0x12a8   :  { %1690 = vrot.lane.b32.xlu0 %v3368_v61, %s2868_s14 }
0x12bd   :  { %v1581_v40 = vpop.permute.xlu1 %1580 }
0x12be   :  { %v1583_v63 = vmul.f32 %v1581_v40, %v1578_v62  ;;  %v58_v40 = vld [vmem:[#allocation3 + $0xa0] sm:$0xff] }
0x12c0   :  { %v3373_v4 = vadd.f32 %v1584_v3, %v1583_v63 }
0x131a   :  { %v1691_v5 = vpop.permute.xlu0 %1690 }
0x131b   :  { %v1693_v6 = vsel %vm127_vm1, %v1691_v5, %v3373_v4  ;;  %2640 = vmatmul.mubr.msk.f32.vlgmr.msra.gmra.mxu0 %vm127_vm1, %v1691_v5 }
0x131c   :  { %2629 = vmatmul.mubr.msk.f32.vlgmr.msra.gmra.mxu1 %vm457_vm10, %v1693_v6  ;;  %2643 = vmatpush3.msra.mxu0 %v3026_v7  ;;  %v342_v7 = vadd.f32 %v3138_v44, %v2973_v30 }
0x131d   :  { %2644 = vmatprep.subr.mxu0 %v2864_v1  ;;  %2658 = vmatprep.mubr.msk.f32.mxu0 %vm2865_vm0, %v2864_v1 }
0x131e   :  { %2645 = vmatpush3.msra.mxu0 %v3030_v9  ;;  %2662 = vmatpush3.msra.mxu1 %v61_v59 }
0x131f   :  { %2646 = vmatprep.subr.mxu0 %v2864_v1 }
0x1320   :  { %2647 = vmatpush3.msra.mxu0 %v3032_v10 }
0x1321   :  { %2648 = vmatprep.subr.mxu0 %v2864_v1 }
0x1322   :  { %2649 = vmatpush3.msra.mxu0 %v3036_v11 }
0x1323   :  { %2650 = vmatprep.subr.mxu0 %v2864_v1 }
0x1324   :  { %2651 = vmatpush3.msra.mxu0 %v3041_v13 }
0x1325   :  { %2652 = vmatprep.subr.mxu0 %v2864_v1 }
0x1326   :  { %2653 = vmatpush3.msra.mxu0 %v3053_v23 }
0x1327   :  { %2654 = vmatprep.subr.mxu0 %v2864_v1 }
0x1328   :  { %2655 = vmatpush3.msra.mxu0 %v3062_v26 }
0x1329   :  { %2656 = vmatprep.subr.mxu0 %v2864_v1 }
0x132a   :  { %2657 = vmatpush3.msra.mxu0 %v3065_v27 }
0x13db   :  { %v1865_v9 = vpop.f32.mrf.mxu0 }
0x13dc   :  { %v1869_v10 = vadd.f32 %v1865_v9, %v342_v7  ;;  %v1763_v11 = vpop.f32.mrf.mxu1 }
0x13dd   :  { %v1764_v13 = vadd.f32 %v3145_v46, %v1763_v11  ;;  %v2641_v0 = vpop.f32.mrf.mxu0 }
0x13de   :  { %1877 = vrot.lane.b32.xlu0 %v1869_v10, %s2866_s12  ;;  %v2630_v23 = vpop.f32.mrf.mxu1  ;;  %v2237_v8 = vmul.f32 -1.442695, %v1869_v10 }
0x13df   :  { %1774 = vrot.lane.b32.xlu1 %v1764_v13, %s2866_s12  ;;  %v2235_v26 = vmul.f32 -1.442695, %v1764_v13 }
0x13e0   :  { %2772 = vpow2.f32 %v2237_v8 }
0x13e1   :  { %2774 = vpow2.f32 %v2235_v26 }
0x13ed   :  { %v2773_v1 = vpop.eup %2772 }
0x13ee   :  { %v2775_v27 = vpop.eup %2774  ;;  %v1873_v17 = vadd.f32 1.0, %v2773_v1 }
0x13ef   :  { %v1770_v18 = vadd.f32 1.0, %v2775_v27 }
0x13f0   :  { %2776 = vrcp.f32 %v1873_v17 }
0x13f1   :  { %2778 = vrcp.f32 %v1770_v18 }
0x13fd   :  { %v2777_v30 = vpop.eup %2776 }
0x13fe   :  { %v2779_v20 = vpop.eup %2778  ;;  %v1887_v38 = vsub.f32 1.0, %v2777_v30  ;;  %v1893_v12 = vmul.f32 %v2777_v30, %v3368_v61  ;;  %v60_v61 = vld [vmem:[#allocation3 + $0xb0] sm:$0xff] }
0x13ff   :  { %v1784_v47 = vsub.f32 1.0, %v2779_v20  ;;  %v1790_v45 = vmul.f32 %v2779_v20, %v3373_v4  ;;  %2663 = vmatprep.subr.mxu1 %v60_v61 }
0x1400   :  { %2664 = vmatpush3.msra.mxu1 %v60_v61 }
0x1450   :  { %v1878_v44 = vpop.permute.xlu0 %1877 }
0x1451   :  { %v1880_v22 = vmul.f32 %v2777_v30, %v1878_v44  ;;  %v1775_v25 = vpop.permute.xlu1 %1774 }
0x1452   :  { %v1777_v29 = vmul.f32 %v2779_v20, %v1775_v25 }
0x1453   :  { %1882 = vrot.lane.b32.xlu0 %v1880_v22, %s2867_s13 }
0x1454   :  { %1779 = vrot.lane.b32.xlu1 %v1777_v29, %s2867_s13 }
0x14c5   :  { %v1883_v28 = vpop.permute.xlu0 %1882 }
0x14c6   :  { %v1885_v31 = vadd.f32 %v1883_v28, %v1869_v10  ;;  %v1780_v32 = vpop.permute.xlu1 %1779 }
0x14c7   :  { %v1782_v34 = vadd.f32 %v1780_v32, %v1764_v13 }
0x14c8   :  { %2780 = vtanh.f32 %v1885_v31 }
0x14c9   :  { %2782 = vtanh.f32 %v1782_v34 }
0x14d5   :  { %v2781_v36 = vpop.eup %2780 }
0x14d6   :  { %v2783_v37 = vpop.eup %2782  ;;  %1889 = vrot.lane.b32.xlu0 %v2781_v36, %s2868_s14 }
0x14d7   :  { %1786 = vrot.lane.b32.xlu1 %v2783_v37, %s2868_s14 }
0x1548   :  { %v1890_v35 = vpop.permute.xlu0 %1889 }
0x1549   :  { %v1892_v39 = vmul.f32 %v1890_v35, %v1887_v38  ;;  %v1787_v41 = vpop.permute.xlu1 %1786 }
0x154a   :  { %v1789_v14 = vmul.f32 %v1787_v41, %v1784_v47 }
0x154b   :  { %v1894_v19 = vadd.f32 %v1893_v12, %v1892_v39 }
0x154c   :  { %v1791_v48 = vadd.f32 %v1790_v45, %v1789_v14 }
0x154d   :  { %1896 = vrot.lane.b32.xlu0 %v1894_v19, %s2868_s14 }
0x15bf   :  { %v1897_v15 = vpop.permute.xlu0 %1896 }
0x15c0   :  { %v1899_v49 = vsel %vm127_vm1, %v1897_v15, %v1791_v48  ;;  %2152 = vst.msk [vmem:[#allocation7] sm:$0xff] %vm127_vm1, %v1897_v15 }
0x15c1   :  { %2659 = vmatmul.mubr.msk.f32.vlgmr.msra.gmra.mxu0 %vm457_vm10, %v1899_v49 }
0x1681   :  { %v1969_v50 = vpop.f32.mrf.mxu0 }
0x1682   :  { %v1970_v16 = vadd.f32 %v3145_v46, %v1969_v50 }
0x1683   :  { %v2660_v51 = vpop.f32.mrf.mxu0 }
0x1684   :  { %1980 = vrot.lane.b32.xlu1 %v1970_v16, %s2866_s12  ;;  %v2239_v52 = vmul.f32 -1.442695, %v1970_v16 }
0x1686   :  { %2784 = vpow2.f32 %v2239_v52 }
0x1693   :  { %v2785_v42 = vpop.eup %2784 }
0x1694   :  { %v1976_v54 = vadd.f32 1.0, %v2785_v42 }
0x1696   :  { %2786 = vrcp.f32 %v1976_v54 }
0x16a3   :  { %v2787_v43 = vpop.eup %2786 }
0x16a4   :  { %v1990_v3 = vsub.f32 1.0, %v2787_v43  ;;  %v1996_v6 = vmul.f32 %v2787_v43, %v1791_v48 }
0x16f6   :  { %v1981_v55 = vpop.permute.xlu1 %1980 }
0x16f7   :  { %v1983_v56 = vmul.f32 %v2787_v43, %v1981_v55 }
0x16f9   :  { %1985 = vrot.lane.b32.xlu0 %v1983_v56, %s2867_s13 }
0x16fd   :  { %557 = vrot.lane.b32.xlu0 %v3156_v24, %s2868_s14  ;;  %v59_v24 = vld [vmem:[#allocation3 + $0xa8] sm:$0xff] }
0x16fe   :  { %2665 = vmatprep.subr.mxu1 %v59_v24 }
0x16ff   :  { %2666 = vmatpush3.msra.mxu1 %v59_v24 }
0x1700   :  { %2667 = vmatprep.subr.mxu1 %v58_v40 }
0x1701   :  { %969 = vrot.lane.b32.xlu0 %v3253_v53, %s2868_s14  ;;  %2668 = vmatpush3.msra.mxu1 %v58_v40 }
0x1705   :  { %1381 = vrot.lane.b32.xlu0 %v3347_v21, %s2868_s14 }
0x1709   :  { %1793 = vrot.lane.b32.xlu0 %v1791_v48, %s2868_s14 }
0x176b   :  { %v1986_v46 = vpop.permute.xlu0 %1985 }
0x176c   :  { %v1988_v57 = vadd.f32 %v1986_v46, %v1970_v16 }
0x176e   :  { %2788 = vtanh.f32 %v1988_v57 }
0x176f   :  { %v558_v58 = vpop.permute.xlu0 %557 }
0x1770   :  { %560 = vst.msk [vmem:[#allocation2] sm:$0xff] %vm127_vm1, %v558_v58 }
0x1773   :  { %v970_v60 = vpop.permute.xlu0 %969 }
0x1774   :  { %972 = vst.msk [vmem:[#allocation2 + $0x10] sm:$0xff] %vm127_vm1, %v970_v60 }
0x1777   :  { %v1382_v53 = vpop.permute.xlu0 %1381  ;;  %v2003_v21 = vld [vmem:[#allocation2] sm:$0xff] }
0x1778   :  { %1384 = vst.msk [vmem:[#allocation2 + $0x20] sm:$0xff] %vm127_vm1, %v1382_v53  ;;  %2669 = vmatprep.mubr.msk.f32.mxu1 %vm127_vm1, %v2003_v21 }
0x177b   :  { %v2789_v62 = vpop.eup %2788  ;;  %v1794_v63 = vpop.permute.xlu0 %1793 }
0x177c   :  { %1796 = vst.msk [vmem:[#allocation2 + $0x30] sm:$0xff] %vm127_vm1, %v1794_v63  ;;  %1992 = vrot.lane.b32.xlu1 %v2789_v62, %s2868_s14 }
0x177f   :  { %v2007_v0 = vld [vmem:[#allocation2 + $0x20] sm:$0xff] }
0x1780   :  { %763 = vrot.lane.b32.xlu1 %v3205_v2, %s2868_s14 }
0x1783   :  { %v2009_v8 = vld [vmem:[#allocation2 + $0x30] sm:$0xff] }
0x1784   :  { %1175 = vrot.lane.b32.xlu1 %v3299_v33, %s2868_s14  ;;  %v2005_v33 = vld [vmem:[#allocation2 + $0x10] sm:$0xff] }
0x1788   :  { %1587 = vrot.lane.b32.xlu1 %v3373_v4, %s2868_s14 }
0x17ee   :  { %v1993_v5 = vpop.permute.xlu1 %1992 }
0x17ef   :  { %v1995_v7 = vmul.f32 %v1993_v5, %v1990_v3 }
0x17f1   :  { %v1997_v9 = vadd.f32 %v1996_v6, %v1995_v7 }
0x17f2   :  { %v764_v10 = vpop.permute.xlu1 %763 }
0x17f3   :  { %766 = vst.msk [vmem:[#allocation2 + $0x8] sm:$0xff] %vm127_vm1, %v764_v10  ;;  %1999 = vrot.lane.b32.xlu1 %v1997_v9, %s2868_s14 }
0x17f6   :  { %v1176_v11 = vpop.permute.xlu1 %1175 }
0x17f7   :  { %1178 = vst.msk [vmem:[#allocation2 + $0x18] sm:$0xff] %vm127_vm1, %v1176_v11 }
0x17fa   :  { %v1588_v2 = vpop.permute.xlu1 %1587  ;;  %v2004_v13 = vld [vmem:[#allocation2 + $0x8] sm:$0xff] }
0x17fb   :  { %1590 = vst.msk [vmem:[#allocation2 + $0x28] sm:$0xff] %vm127_vm1, %v1588_v2  ;;  %2670 = vmatmul.mubr.msk.f32.vlgmr.msra.gmra.mxu1 %vm127_vm1, %v2004_v13 }
0x17fc   :  { %2672 = vmatprep.mubr.msk.f32.mxu1 %vm127_vm1, %v2005_v33 }
0x17fe   :  { %v2006_v4 = vld [vmem:[#allocation2 + $0x18] sm:$0xff] }
0x17ff   :  { %2673 = vmatmul.mubr.msk.f32.gmra.mxu1 %vm127_vm1, %v2006_v4 }
0x1800   :  { %2675 = vmatprep.mubr.msk.f32.mxu1 %vm127_vm1, %v2007_v0 }
0x1802   :  { %v2008_v23 = vld [vmem:[#allocation2 + $0x28] sm:$0xff] }
0x1803   :  { %2676 = vmatmul.mubr.msk.f32.gmra.mxu1 %vm127_vm1, %v2008_v23 }
0x1804   :  { %2678 = vmatprep.mubr.msk.f32.mxu1 %vm127_vm1, %v2009_v8 }
0x1865   :  { %v2000_v26 = vpop.permute.xlu1 %1999 }
0x1866   :  { %2002 = vst.msk [vmem:[#allocation2 + $0x38] sm:$0xff] %vm127_vm1, %v2000_v26  ;;  %2154 = vst.msk [vmem:[#allocation7 + $0x8] sm:$0xff] %vm127_vm1, %v2000_v26 }
0x186d   :  { %v2010_v1 = vld [vmem:[#allocation2 + $0x38] sm:$0xff] }
0x186e   :  { %2679 = vmatmul.mubr.msk.f32.gmra.mxu1 %vm127_vm1, %v2010_v1 }
0x186f   :  { %2825 = shalt.err (!%p2822_p9)
}
0x1870   :  { %2178 = dma.vmem_to_hbm [thread:$0]  %s2173_s7, 256, %s3467_s6, [#allocation8], %s2861_s24, %s2861_s24, %s2862_s25  }
0x1871   :  { %v2240_v27 = vld [vmem:[%s3465_s4 + $0x2] ss:$0 sm:$0xff]  ;;  %s2870_s4 = smov [#allocation6]  }
0x1872   :  { %s2160_s6 = sshll.u32 %s2870_s4, 4  ;;  %s2161_s6 = int_to_ptr.vmem [resolvable:$true] %s2160_s6 }
0x1873   :  { %s2834_s12 = scalar_lea.vmem %s2161_s6, 1024  ;;  %p2839_p11 = scmp.lt.s32.totalorder %s2161_s6, %s2161_s6 }
0x1874   :  { %p2835_p10 = scmp.ne.s32.totalorder %s2161_s6, %s2834_s12  ;;  %p2840_p12 = scmp.lt.s32.totalorder %s2834_s12, %s2834_s12 }
0x1876   :  { %p2841_p13 = por %p2840_p12, %p2839_p11 }
0x1878   :  { %p2842_p0 = pnand %p2841_p13, %p2835_p10 }
0x18bb   :  { %v2671_v17 = vpop.f32.mrf.mxu1 }
0x18bc   :  { %v2111_v18 = vadd.f32 %v2671_v17, %v2240_v27 }
0x18bd   :  { %v2105_v30 = vpop.f32.mrf.mxu1 }
0x18be   :  { %2145 = vst [vmem:[#allocation6 + $0x8] sm:$0xff] %v2111_v18  ;;  %v2106_v44 = vadd.f32 %v2240_v27, %v2105_v30 }
0x18bf   :  { %v2674_v20 = vpop.f32.mrf.mxu1 }
0x18c0   :  { %2144 = vst [vmem:[#allocation6] sm:$0xff] %v2106_v44  ;;  %v2121_v22 = vadd.f32 %v2674_v20, %v2240_v27 }
0x18c1   :  { %v2115_v25 = vpop.f32.mrf.mxu1 }
0x18c2   :  { %2147 = vst [vmem:[#allocation6 + $0x18] sm:$0xff] %v2121_v22  ;;  %v2116_v29 = vadd.f32 %v2240_v27, %v2115_v25 }
0x18c3   :  { %v2677_v28 = vpop.f32.mrf.mxu1 }
0x18c4   :  { %2146 = vst [vmem:[#allocation6 + $0x10] sm:$0xff] %v2116_v29  ;;  %v2131_v31 = vadd.f32 %v2677_v28, %v2240_v27 }
0x18c5   :  { %v2125_v32 = vpop.f32.mrf.mxu1 }
0x18c6   :  { %2149 = vst [vmem:[#allocation6 + $0x28] sm:$0xff] %v2131_v31  ;;  %v2126_v34 = vadd.f32 %v2240_v27, %v2125_v32 }
0x18c8   :  { %2148 = vst [vmem:[#allocation6 + $0x20] sm:$0xff] %v2126_v34 }
0x192e   :  { %v2680_v36 = vpop.f32.mrf.mxu1 }
0x192f   :  { %v2141_v37 = vadd.f32 %v2680_v36, %v2240_v27 }
0x1930   :  { %v2135_v38 = vpop.f32.mrf.mxu1 }
0x1931   :  { %2151 = vst [vmem:[#allocation6 + $0x38] sm:$0xff] %v2141_v37  ;;  %v2136_v35 = vadd.f32 %v2240_v27, %v2135_v38 }
0x1933   :  { %2150 = vst [vmem:[#allocation6 + $0x30] sm:$0xff] %v2136_v35 }
0x1934   :  { %2845 = shalt.err (!%p2842_p0)
}
0x1935   :  { %2166 = dma.vmem_to_hbm [thread:$0]  %s2161_s6, 1024, %s3466_s5, [#allocation5], %s2861_s24, %s2861_s24, %s2862_s25  }
0x1936   :  { %2856 = dma.done.wait [#allocation5], 1024  }
0x1937   :  { %2857 = vsyncadd [#allocation5], 4294966272 }
0x1938   :  { %2858 = dma.done.wait [#allocation8], 256  }
0x1939   :  { %2859 = vsyncadd [#allocation8], 4294967040 }
0x193a   :  { %2185 = vsyncpa [#allocation4], 1 }
0x193b   :  { %2186 = vsyncpa [#allocation5], 1 }
0x193c   :  { %2187 = vsyncpa [#allocation8], 1 }

</bundles_post_ra>
